<compile_context>
chip_gen: v5e
topology: v5e:2x2
jax: 0.10.0
libtpu: 0.0.40
codegen_flags: <defaults>
</compile_context>

<pallas_src>
import functools

import jax
import jax.numpy as jnp
from jax import lax
from jax.experimental import pallas as pl
from jax.experimental.pallas import tpu as pltpu


# ---------------------------------------------------------------------------
# Shape helpers / host-side im2col for conv1 (the HBM -> patch-matrix loader).
# ---------------------------------------------------------------------------
def _conv_out(n, k=3, s=2):
    return (n - k) // s + 1


def _round_up(n, m):
    return ((n + m - 1) // m) * m


def _im2col_conv1(x_nchw, k=3, s=2):
    """NCHW input -> conv1 patch matrix.

    Row ordering: row = (i*ow + j)*B + b   (spatial-position major, batch minor)
    Col ordering: col = (di*k + dj)*C + c  (kh, kw, c_in)
    so `rows @ torch_w.transpose(2,3,1,0).reshape(k*k*C, OC)` reproduces
    torch.nn.Conv2d(kernel=3, stride=2, padding=0) exactly.
    """
    B, C, H, W = x_nchw.shape
    oh, ow = _conv_out(H, k, s), _conv_out(W, k, s)
    taps = []
    for di in range(k):
        for dj in range(k):
            taps.append(x_nchw[:, :, di:di + s * (oh - 1) + 1:s,
                                     dj:dj + s * (ow - 1) + 1:s])   # (B, C, oh, ow)
    p = jnp.stack(taps, axis=1)           # (B, k*k, C, oh, ow)
    p = p.transpose(3, 4, 0, 1, 2)        # (oh, ow, B, k*k, C)
    return p.reshape(oh * ow * B, k * k * C), oh, ow


# ---------------------------------------------------------------------------
# Fused encoder kernel for the 3-D (conv) branch:
#   conv1 -> ReLU -> conv2 -> ReLU -> Flatten -> Linear, all in one VMEM-resident pass.
# ---------------------------------------------------------------------------
def _encoder3d_kernel(p1_ref, w1_ref, b1_ref, w2_ref, b2_ref, wf_ref, bf_ref,
                      out_ref, *, bp, ow1, oh2, ow2):
    npos = oh2 * ow2

    # conv1: one im2col matmul (bf16 operands, f32 accumulate), bias + ReLU in f32,
    # then a SINGLE bf16 downcast of the whole activation slab.
    h1 = jnp.dot(p1_ref[...], w1_ref[...], preferred_element_type=jnp.float32)
    h1 = jnp.maximum(h1 + b1_ref[...], 0.0).astype(jnp.bfloat16)   # (oh1*ow1*BP, 32)

    # conv2 im2col inside VMEM: every tap is an aligned static slice (BP multiple of
    # 16), lane-concatenated to K=288 per output position, positions row-concatenated
    # -> ONE deep-K MXU matmul for the whole conv2.
    blocks = []
    for i in range(oh2):
        for j in range(ow2):
            taps = []
            for di in range(3):
                for dj in range(3):
                    r = ((2 * i + di) * ow1 + (2 * j + dj)) * bp
                    taps.append(h1[r:r + bp, :])                    # (BP, 32) bf16
            blocks.append(jnp.concatenate(taps, axis=1))            # (BP, 288)
    p2 = jnp.concatenate(blocks, axis=0)                            # (npos*BP, 288)

    h2 = jnp.dot(p2, w2_ref[...], preferred_element_type=jnp.float32)
    h2 = jnp.maximum(h2 + b2_ref[...], 0.0)                         # (npos*BP, 64) f32

    # Flatten (position-major, channel-minor -> matches the pre-permuted fc_w rows)
    # via aligned static slices + lane concatenation, ONE bf16 downcast, and a single
    # K = npos*64 fc matmul; fc bias added once in f32.
    z = jnp.concatenate([h2[p * bp:(p + 1) * bp, :] for p in range(npos)], axis=1)
    z = z.astype(jnp.bfloat16)                                      # (BP, npos*64)
    out_ref[...] = (jnp.dot(z, wf_ref[...], preferred_element_type=jnp.float32)
                    + bf_ref[...])                                  # (BP, feat) f32


def flexible_encoder_3d(x_nchw, kparams):
    B, C, H, W = x_nchw.shape
    oh1, ow1 = _conv_out(H), _conv_out(W)
    oh2, ow2 = _conv_out(oh1), _conv_out(ow1)
    assert oh1 >= 3 and ow1 >= 3 and oh2 >= 1 and ow2 >= 1, \
        "input spatially too small for two stride-2 3x3 convolutions"
    feat = kparams["fc_w"].shape[1]
    npos = oh2 * ow2

    # Pad the batch to a multiple of 16 so every in-kernel tap slice is
    # sublane-aligned for both f32 (8) and packed bf16 (16) layouts and the tiny
    # batch dots use >= 16 MXU rows; padded rows are sliced off at the end.
    bp = max(16, _round_up(B, 16))
    if bp != B:
        pad = jnp.zeros((bp - B, C, H, W), x_nchw.dtype)
        x_nchw = jnp.concatenate([x_nchw, pad], axis=0)

    p1, _, _ = _im2col_conv1(x_nchw)
    p1 = p1.astype(jnp.bfloat16)        # bf16 MXU operand; halves input DMA too.
    # TODO(synk): for non-trivial H,W move conv1's im2col inside the kernel (feed the
    # raw channels-last input and expand taps with static slices like conv2) to avoid
    # the ~2.25x host-side patch inflation of HBM traffic.
    # TODO(synk): on v7x split the (padded) batch / spatial rows across a grid=(2,)
    # axis with dimension_semantics=("parallel",) to use both TensorCores; grid-less
    # is kept here since the demo problem is tiny and fits VMEM on all generations.

    w_bytes = sum(int(v.size) * v.dtype.itemsize for v in kparams.values())
    flops = 2 * (int(p1.shape[0]) * int(p1.shape[1]) * 32
                 + npos * bp * 288 * 64
                 + bp * npos * 64 * feat)
    bytes_accessed = int(p1.size) * 2 + w_bytes + bp * feat * 4

    kernel = functools.partial(_encoder3d_kernel, bp=bp, ow1=ow1, oh2=oh2, ow2=ow2)
    vmem = pl.BlockSpec(memory_space=pltpu.MemorySpace.VMEM)
    out = pl.pallas_call(
        kernel,
        out_shape=jax.ShapeDtypeStruct((bp, feat), jnp.float32),
        in_specs=[vmem] * 7,
        out_specs=vmem,
        cost_estimate=pl.CostEstimate(flops=flops, transcendentals=0,
                                      bytes_accessed=bytes_accessed),
    )(p1, kparams["conv1_w"], kparams["conv1_b"],
      kparams["conv2_w"], kparams["conv2_b"],
      kparams["fc_w"], kparams["fc_b"])
    return out[:B]


# ---------------------------------------------------------------------------
# Fused encoder kernel for the 2-D (MLP) branch: Flatten -> Linear -> ReLU -> Linear.
# ---------------------------------------------------------------------------
def _encoder2d_kernel(x_ref, w1_ref, b1_ref, w2_ref, b2_ref, out_ref):
    h = jnp.dot(x_ref[...], w1_ref[...], preferred_element_type=jnp.float32) + b1_ref[...]
    h = jnp.maximum(h, 0.0).astype(jnp.bfloat16)     # f32 elementwise, one downcast
    out_ref[...] = (jnp.dot(h, w2_ref[...], preferred_element_type=jnp.float32)
                    + b2_ref[...])


def flexible_encoder_2d(x, kparams):
    B = x.shape[0]
    feat = kparams["fc2_w"].shape[1]
    x_flat = x.reshape(B, -1).astype(jnp.bfloat16)
    bp = max(8, _round_up(B, 8))                     # sublane-aligned batch
    if bp != B:
        pad = jnp.zeros((bp - B, x_flat.shape[1]), x_flat.dtype)
        x_flat = jnp.concatenate([x_flat, pad], axis=0)
    d_in = int(x_flat.shape[1])
    hidden = int(kparams["fc1_w"].shape[1])

    w_bytes = sum(int(v.size) * v.dtype.itemsize for v in kparams.values())
    flops = 2 * (bp * d_in * hidden + bp * hidden * feat)
    bytes_accessed = int(x_flat.size) * 2 + w_bytes + bp * feat * 4

    vmem = pl.BlockSpec(memory_space=pltpu.MemorySpace.VMEM)
    out = pl.pallas_call(
        _encoder2d_kernel,
        out_shape=jax.ShapeDtypeStruct((bp, feat), jnp.float32),
        in_specs=[vmem] * 5,
        out_specs=vmem,
        cost_estimate=pl.CostEstimate(flops=flops, transcendentals=0,
                                      bytes_accessed=bytes_accessed),
    )(x_flat, kparams["fc1_w"], kparams["fc1_b"],
      kparams["fc2_w"], kparams["fc2_b"])
    return out[:B]


def flexible_encoder(x, kparams, input_shape):
    if len(input_shape) == 3:
        return flexible_encoder_3d(x, kparams)
    if len(input_shape) == 2:
        return flexible_encoder_2d(x, kparams)
    raise ValueError("Unsupported input shape")


# ---------------------------------------------------------------------------
# Parameters: torch-layout init + one-time conversion to the kernel layout.
# ---------------------------------------------------------------------------
def init_torch_params(input_shape, feature_size, key):
    """Parameters in PyTorch's native layouts (OIHW conv weights, (out,in) Linear).
    Init scale is 1/sqrt(fan_in) normal (not torch's exact uniform)."""
    def w(k, shape, fan_in):
        return jax.random.normal(k, shape, jnp.float32) / jnp.sqrt(fan_in)

    if len(input_shape) == 3:
        C, H, W = input_shape
        oh2, ow2 = _conv_out(_conv_out(H)), _conv_out(_conv_out(W))
        assert oh2 >= 1 and ow2 >= 1, "input spatially too small"
        flat = 64 * oh2 * ow2
        # The torch module sizes its Linear as 64*((H-1)//4)*((W-1)//4); it only runs
        # when that equals the true flatten size, so require consistency here.
        assert flat == 64 * ((H - 1) // 4) * ((W - 1) // 4), \
            "torch module's Linear in_features would not match its conv output"
        ks = jax.random.split(key, 6)
        return {
            "conv1_w": w(ks[0], (32, C, 3, 3), C * 9),
            "conv1_b": w(ks[1], (32,), C * 9),
            "conv2_w": w(ks[2], (64, 32, 3, 3), 32 * 9),
            "conv2_b": w(ks[3], (64,), 32 * 9),
            "fc_w":    w(ks[4], (feature_size, flat), flat),
            "fc_b":    w(ks[5], (feature_size,), flat),
        }
    if len(input_shape) == 2:
        d0, d1 = input_shape
        ks = jax.random.split(key, 4)
        return {
            "fc1_w": w(ks[0], (256, d0 * d1), d0 * d1),
            "fc1_b": w(ks[1], (256,), d0 * d1),
            "fc2_w": w(ks[2], (feature_size, 256), 256),
            "fc2_b": w(ks[3], (feature_size,), 256),
        }
    raise ValueError("Unsupported input shape")


def pack_kernel_params(tp, input_shape):
    """Bake all layout permutations into the weights once (patch order [kh,kw,c_in],
    position-major/channel-minor fc rows) and store MXU operands as bfloat16."""
    if len(input_shape) == 3:
        C, H, W = input_shape
        oh2, ow2 = _conv_out(_conv_out(H)), _conv_out(_conv_out(W))
        feat = tp["fc_w"].shape[0]
        conv1_w = tp["conv1_w"].transpose(2, 3, 1, 0).reshape(9 * C, 32)
        conv2_w = tp["conv2_w"].transpose(2, 3, 1, 0).reshape(9 * 32, 64)
        # torch Flatten is over (c, i, j) of the NCHW conv2 output; the kernel
        # produces features ordered (i, j, c), so permute the fc rows to match.
        fc_w = (tp["fc_w"].reshape(feat, 64, oh2, ow2)
                          .transpose(2, 3, 1, 0)
                          .reshape(oh2 * ow2 * 64, feat))
        return {
            "conv1_w": conv1_w.astype(jnp.bfloat16),
            "conv1_b": tp["conv1_b"].reshape(1, 32),
            "conv2_w": conv2_w.astype(jnp.bfloat16),
            "conv2_b": tp["conv2_b"].reshape(1, 64),
            "fc_w":    fc_w.astype(jnp.bfloat16),
            "fc_b":    tp["fc_b"].reshape(1, feat),
        }
    feat = tp["fc2_w"].shape[0]
    return {
        "fc1_w": tp["fc1_w"].T.astype(jnp.bfloat16),
        "fc1_b": tp["fc1_b"].reshape(1, 256),
        "fc2_w": tp["fc2_w"].T.astype(jnp.bfloat16),
        "fc2_b": tp["fc2_b"].reshape(1, feat),
    }


# ---------------------------------------------------------------------------
# Pure-JAX reference (torch-layout weights) for a correctness check.
# ---------------------------------------------------------------------------
def encoder_reference(x, tp, input_shape):
    if len(input_shape) == 3:
        y = lax.conv_general_dilated(x, tp["conv1_w"], (2, 2), "VALID",
                                     dimension_numbers=("NCHW", "OIHW", "NCHW"))
        y = jnp.maximum(y + tp["conv1_b"][None, :, None, None], 0.0)
        y = lax.conv_general_dilated(y, tp["conv2_w"], (2, 2), "VALID",
                                     dimension_numbers=("NCHW", "OIHW", "NCHW"))
        y = jnp.maximum(y + tp["conv2_b"][None, :, None, None], 0.0)
        y = y.reshape(x.shape[0], -1)                 # NCHW flatten: (c, h, w)
        return y @ tp["fc_w"].T + tp["fc_b"][None, :]
    y = x.reshape(x.shape[0], -1)
    y = jnp.maximum(y @ tp["fc1_w"].T + tp["fc1_b"][None, :], 0.0)
    return y @ tp["fc2_w"].T + tp["fc2_b"][None, :]


# ---------------------------------------------------------------------------
# Demo / smoke test.
# ---------------------------------------------------------------------------
if __name__ == "__main__":
    feature_size = 256
    batch = 2

    # --- 3-D (conv) branch: primary path ------------------------------------
    input_shape = (4, 16, 16)                         # (C, H, W)
    key = jax.random.PRNGKey(0)
    kp_key, kx_key = jax.random.split(key)
    torch_params = init_torch_params(input_shape, feature_size, kp_key)
    kparams = pack_kernel_params(torch_params, input_shape)
    x = jax.random.normal(kx_key, (batch,) + input_shape, jnp.float32)

    enc3d = jax.jit(functools.partial(flexible_encoder, input_shape=input_shape))
    out = enc3d(x, kparams)
    jax.block_until_ready(out)
    assert out.shape == (batch, feature_size)

    ref = encoder_reference(x, torch_params, input_shape)
    err = float(jnp.max(jnp.abs(out - ref)))
    assert err < 0.15, f"3-D branch mismatch: max|diff|={err}"

    # --- 2-D (MLP) branch ----------------------------------------------------
    input_shape_2d = (6, 8)
    tp2 = init_torch_params(input_shape_2d, feature_size, jax.random.PRNGKey(1))
    kp2 = pack_kernel_params(tp2, input_shape_2d)
    x2 = jax.random.normal(jax.random.PRNGKey(2), (batch,) + input_shape_2d, jnp.float32)

    enc2d = jax.jit(functools.partial(flexible_encoder, input_shape=input_shape_2d))
    out2 = enc2d(x2, kp2)
    jax.block_until_ready(out2)
    assert out2.shape == (batch, feature_size)

    ref2 = encoder_reference(x2, tp2, input_shape_2d)
    err2 = float(jnp.max(jnp.abs(out2 - ref2)))
    assert err2 < 0.15, f"2-D branch mismatch: max|diff|={err2}"

    print("KERNEL_OK")
</pallas_src>

<mosaic_0001>
module attributes {stable_mosaic.version = 11 : i64} {
  func.func @_encoder3d_kernel(%arg0: memref<784x36xbf16, #tpu.memory_space<vmem>>, %arg1: memref<36x32xbf16, #tpu.memory_space<vmem>>, %arg2: memref<1x32xf32, #tpu.memory_space<vmem>>, %arg3: memref<288x64xbf16, #tpu.memory_space<vmem>>, %arg4: memref<1x64xf32, #tpu.memory_space<vmem>>, %arg5: memref<576x256xbf16, #tpu.memory_space<vmem>>, %arg6: memref<1x256xf32, #tpu.memory_space<vmem>>, %arg7: memref<16x256xf32, #tpu.memory_space<vmem>>) attributes {dimension_semantics = [], scalar_prefetch = 0 : i64, scratch_operands = 0 : i64, tpu.core_type = #tpu.core_type<tc>} {
    %c0 = arith.constant 0 : index
    %c0_0 = arith.constant 0 : index
    %0 = vector.load %arg0[%c0, %c0_0] : memref<784x36xbf16, #tpu.memory_space<vmem>>, vector<784x36xbf16>
    %c0_1 = arith.constant 0 : index
    %c0_2 = arith.constant 0 : index
    %1 = vector.load %arg1[%c0_1, %c0_2] : memref<36x32xbf16, #tpu.memory_space<vmem>>, vector<36x32xbf16>
    %cst = arith.constant dense<0.000000e+00> : vector<784x32xf32>
    %2 = tpu.matmul %0, %1, %cst {dimension_numbers = #tpu.dot_dimension_numbers<[1], [0], [0], [1], [0, 0, 1, 1], [], []>} : vector<784x36xbf16>, vector<36x32xbf16>, vector<784x32xf32> -> vector<784x32xf32>
    %c0_3 = arith.constant 0 : index
    %c0_4 = arith.constant 0 : index
    %3 = vector.load %arg2[%c0_3, %c0_4] : memref<1x32xf32, #tpu.memory_space<vmem>>, vector<1x32xf32>
    %4 = vector.broadcast %3 : vector<1x32xf32> to vector<784x32xf32>
    %5 = arith.addf %2, %4 : vector<784x32xf32>
    %cst_5 = arith.constant 0.000000e+00 : f32
    %6 = vector.broadcast %cst_5 : f32 to vector<784x32xf32>
    %7 = arith.maximumf %5, %6 : vector<784x32xf32>
    %8 = arith.truncf %7 : vector<784x32xf32> to vector<784x32xbf16>
    %9 = vector.extract_strided_slice %8 {offsets = [0, 0], sizes = [16, 32], strides = [1, 1]} : vector<784x32xbf16> to vector<16x32xbf16>
    %10 = vector.extract_strided_slice %8 {offsets = [16, 0], sizes = [16, 32], strides = [1, 1]} : vector<784x32xbf16> to vector<16x32xbf16>
    %11 = vector.extract_strided_slice %8 {offsets = [32, 0], sizes = [16, 32], strides = [1, 1]} : vector<784x32xbf16> to vector<16x32xbf16>
    %12 = vector.extract_strided_slice %8 {offsets = [112, 0], sizes = [16, 32], strides = [1, 1]} : vector<784x32xbf16> to vector<16x32xbf16>
    %13 = vector.extract_strided_slice %8 {offsets = [128, 0], sizes = [16, 32], strides = [1, 1]} : vector<784x32xbf16> to vector<16x32xbf16>
    %14 = vector.extract_strided_slice %8 {offsets = [144, 0], sizes = [16, 32], strides = [1, 1]} : vector<784x32xbf16> to vector<16x32xbf16>
    %15 = vector.extract_strided_slice %8 {offsets = [224, 0], sizes = [16, 32], strides = [1, 1]} : vector<784x32xbf16> to vector<16x32xbf16>
    %16 = vector.extract_strided_slice %8 {offsets = [240, 0], sizes = [16, 32], strides = [1, 1]} : vector<784x32xbf16> to vector<16x32xbf16>
    %17 = vector.extract_strided_slice %8 {offsets = [256, 0], sizes = [16, 32], strides = [1, 1]} : vector<784x32xbf16> to vector<16x32xbf16>
    %18 = tpu.concatenate %9, %10, %11, %12, %13, %14, %15, %16, %17 in 1 : vector<16x32xbf16>, vector<16x32xbf16>, vector<16x32xbf16>, vector<16x32xbf16>, vector<16x32xbf16>, vector<16x32xbf16>, vector<16x32xbf16>, vector<16x32xbf16>, vector<16x32xbf16> -> vector<16x288xbf16>
    %19 = vector.extract_strided_slice %8 {offsets = [32, 0], sizes = [16, 32], strides = [1, 1]} : vector<784x32xbf16> to vector<16x32xbf16>
    %20 = vector.extract_strided_slice %8 {offsets = [48, 0], sizes = [16, 32], strides = [1, 1]} : vector<784x32xbf16> to vector<16x32xbf16>
    %21 = vector.extract_strided_slice %8 {offsets = [64, 0], sizes = [16, 32], strides = [1, 1]} : vector<784x32xbf16> to vector<16x32xbf16>
    %22 = vector.extract_strided_slice %8 {offsets = [144, 0], sizes = [16, 32], strides = [1, 1]} : vector<784x32xbf16> to vector<16x32xbf16>
    %23 = vector.extract_strided_slice %8 {offsets = [160, 0], sizes = [16, 32], strides = [1, 1]} : vector<784x32xbf16> to vector<16x32xbf16>
    %24 = vector.extract_strided_slice %8 {offsets = [176, 0], sizes = [16, 32], strides = [1, 1]} : vector<784x32xbf16> to vector<16x32xbf16>
    %25 = vector.extract_strided_slice %8 {offsets = [256, 0], sizes = [16, 32], strides = [1, 1]} : vector<784x32xbf16> to vector<16x32xbf16>
    %26 = vector.extract_strided_slice %8 {offsets = [272, 0], sizes = [16, 32], strides = [1, 1]} : vector<784x32xbf16> to vector<16x32xbf16>
    %27 = vector.extract_strided_slice %8 {offsets = [288, 0], sizes = [16, 32], strides = [1, 1]} : vector<784x32xbf16> to vector<16x32xbf16>
    %28 = tpu.concatenate %19, %20, %21, %22, %23, %24, %25, %26, %27 in 1 : vector<16x32xbf16>, vector<16x32xbf16>, vector<16x32xbf16>, vector<16x32xbf16>, vector<16x32xbf16>, vector<16x32xbf16>, vector<16x32xbf16>, vector<16x32xbf16>, vector<16x32xbf16> -> vector<16x288xbf16>
    %29 = vector.extract_strided_slice %8 {offsets = [64, 0], sizes = [16, 32], strides = [1, 1]} : vector<784x32xbf16> to vector<16x32xbf16>
    %30 = vector.extract_strided_slice %8 {offsets = [80, 0], sizes = [16, 32], strides = [1, 1]} : vector<784x32xbf16> to vector<16x32xbf16>
    %31 = vector.extract_strided_slice %8 {offsets = [96, 0], sizes = [16, 32], strides = [1, 1]} : vector<784x32xbf16> to vector<16x32xbf16>
    %32 = vector.extract_strided_slice %8 {offsets = [176, 0], sizes = [16, 32], strides = [1, 1]} : vector<784x32xbf16> to vector<16x32xbf16>
    %33 = vector.extract_strided_slice %8 {offsets = [192, 0], sizes = [16, 32], strides = [1, 1]} : vector<784x32xbf16> to vector<16x32xbf16>
    %34 = vector.extract_strided_slice %8 {offsets = [208, 0], sizes = [16, 32], strides = [1, 1]} : vector<784x32xbf16> to vector<16x32xbf16>
    %35 = vector.extract_strided_slice %8 {offsets = [288, 0], sizes = [16, 32], strides = [1, 1]} : vector<784x32xbf16> to vector<16x32xbf16>
    %36 = vector.extract_strided_slice %8 {offsets = [304, 0], sizes = [16, 32], strides = [1, 1]} : vector<784x32xbf16> to vector<16x32xbf16>
    %37 = vector.extract_strided_slice %8 {offsets = [320, 0], sizes = [16, 32], strides = [1, 1]} : vector<784x32xbf16> to vector<16x32xbf16>
    %38 = tpu.concatenate %29, %30, %31, %32, %33, %34, %35, %36, %37 in 1 : vector<16x32xbf16>, vector<16x32xbf16>, vector<16x32xbf16>, vector<16x32xbf16>, vector<16x32xbf16>, vector<16x32xbf16>, vector<16x32xbf16>, vector<16x32xbf16>, vector<16x32xbf16> -> vector<16x288xbf16>
    %39 = vector.extract_strided_slice %8 {offsets = [224, 0], sizes = [16, 32], strides = [1, 1]} : vector<784x32xbf16> to vector<16x32xbf16>
    %40 = vector.extract_strided_slice %8 {offsets = [240, 0], sizes = [16, 32], strides = [1, 1]} : vector<784x32xbf16> to vector<16x32xbf16>
    %41 = vector.extract_strided_slice %8 {offsets = [256, 0], sizes = [16, 32], strides = [1, 1]} : vector<784x32xbf16> to vector<16x32xbf16>
    %42 = vector.extract_strided_slice %8 {offsets = [336, 0], sizes = [16, 32], strides = [1, 1]} : vector<784x32xbf16> to vector<16x32xbf16>
    %43 = vector.extract_strided_slice %8 {offsets = [352, 0], sizes = [16, 32], strides = [1, 1]} : vector<784x32xbf16> to vector<16x32xbf16>
    %44 = vector.extract_strided_slice %8 {offsets = [368, 0], sizes = [16, 32], strides = [1, 1]} : vector<784x32xbf16> to vector<16x32xbf16>
    %45 = vector.extract_strided_slice %8 {offsets = [448, 0], sizes = [16, 32], strides = [1, 1]} : vector<784x32xbf16> to vector<16x32xbf16>
    %46 = vector.extract_strided_slice %8 {offsets = [464, 0], sizes = [16, 32], strides = [1, 1]} : vector<784x32xbf16> to vector<16x32xbf16>
    %47 = vector.extract_strided_slice %8 {offsets = [480, 0], sizes = [16, 32], strides = [1, 1]} : vector<784x32xbf16> to vector<16x32xbf16>
    %48 = tpu.concatenate %39, %40, %41, %42, %43, %44, %45, %46, %47 in 1 : vector<16x32xbf16>, vector<16x32xbf16>, vector<16x32xbf16>, vector<16x32xbf16>, vector<16x32xbf16>, vector<16x32xbf16>, vector<16x32xbf16>, vector<16x32xbf16>, vector<16x32xbf16> -> vector<16x288xbf16>
    %49 = vector.extract_strided_slice %8 {offsets = [256, 0], sizes = [16, 32], strides = [1, 1]} : vector<784x32xbf16> to vector<16x32xbf16>
    %50 = vector.extract_strided_slice %8 {offsets = [272, 0], sizes = [16, 32], strides = [1, 1]} : vector<784x32xbf16> to vector<16x32xbf16>
    %51 = vector.extract_strided_slice %8 {offsets = [288, 0], sizes = [16, 32], strides = [1, 1]} : vector<784x32xbf16> to vector<16x32xbf16>
    %52 = vector.extract_strided_slice %8 {offsets = [368, 0], sizes = [16, 32], strides = [1, 1]} : vector<784x32xbf16> to vector<16x32xbf16>
    %53 = vector.extract_strided_slice %8 {offsets = [384, 0], sizes = [16, 32], strides = [1, 1]} : vector<784x32xbf16> to vector<16x32xbf16>
    %54 = vector.extract_strided_slice %8 {offsets = [400, 0], sizes = [16, 32], strides = [1, 1]} : vector<784x32xbf16> to vector<16x32xbf16>
    %55 = vector.extract_strided_slice %8 {offsets = [480, 0], sizes = [16, 32], strides = [1, 1]} : vector<784x32xbf16> to vector<16x32xbf16>
    %56 = vector.extract_strided_slice %8 {offsets = [496, 0], sizes = [16, 32], strides = [1, 1]} : vector<784x32xbf16> to vector<16x32xbf16>
    %57 = vector.extract_strided_slice %8 {offsets = [512, 0], sizes = [16, 32], strides = [1, 1]} : vector<784x32xbf16> to vector<16x32xbf16>
    %58 = tpu.concatenate %49, %50, %51, %52, %53, %54, %55, %56, %57 in 1 : vector<16x32xbf16>, vector<16x32xbf16>, vector<16x32xbf16>, vector<16x32xbf16>, vector<16x32xbf16>, vector<16x32xbf16>, vector<16x32xbf16>, vector<16x32xbf16>, vector<16x32xbf16> -> vector<16x288xbf16>
    %59 = vector.extract_strided_slice %8 {offsets = [288, 0], sizes = [16, 32], strides = [1, 1]} : vector<784x32xbf16> to vector<16x32xbf16>
    %60 = vector.extract_strided_slice %8 {offsets = [304, 0], sizes = [16, 32], strides = [1, 1]} : vector<784x32xbf16> to vector<16x32xbf16>
    %61 = vector.extract_strided_slice %8 {offsets = [320, 0], sizes = [16, 32], strides = [1, 1]} : vector<784x32xbf16> to vector<16x32xbf16>
    %62 = vector.extract_strided_slice %8 {offsets = [400, 0], sizes = [16, 32], strides = [1, 1]} : vector<784x32xbf16> to vector<16x32xbf16>
    %63 = vector.extract_strided_slice %8 {offsets = [416, 0], sizes = [16, 32], strides = [1, 1]} : vector<784x32xbf16> to vector<16x32xbf16>
    %64 = vector.extract_strided_slice %8 {offsets = [432, 0], sizes = [16, 32], strides = [1, 1]} : vector<784x32xbf16> to vector<16x32xbf16>
    %65 = vector.extract_strided_slice %8 {offsets = [512, 0], sizes = [16, 32], strides = [1, 1]} : vector<784x32xbf16> to vector<16x32xbf16>
    %66 = vector.extract_strided_slice %8 {offsets = [528, 0], sizes = [16, 32], strides = [1, 1]} : vector<784x32xbf16> to vector<16x32xbf16>
    %67 = vector.extract_strided_slice %8 {offsets = [544, 0], sizes = [16, 32], strides = [1, 1]} : vector<784x32xbf16> to vector<16x32xbf16>
    %68 = tpu.concatenate %59, %60, %61, %62, %63, %64, %65, %66, %67 in 1 : vector<16x32xbf16>, vector<16x32xbf16>, vector<16x32xbf16>, vector<16x32xbf16>, vector<16x32xbf16>, vector<16x32xbf16>, vector<16x32xbf16>, vector<16x32xbf16>, vector<16x32xbf16> -> vector<16x288xbf16>
    %69 = vector.extract_strided_slice %8 {offsets = [448, 0], sizes = [16, 32], strides = [1, 1]} : vector<784x32xbf16> to vector<16x32xbf16>
    %70 = vector.extract_strided_slice %8 {offsets = [464, 0], sizes = [16, 32], strides = [1, 1]} : vector<784x32xbf16> to vector<16x32xbf16>
    %71 = vector.extract_strided_slice %8 {offsets = [480, 0], sizes = [16, 32], strides = [1, 1]} : vector<784x32xbf16> to vector<16x32xbf16>
    %72 = vector.extract_strided_slice %8 {offsets = [560, 0], sizes = [16, 32], strides = [1, 1]} : vector<784x32xbf16> to vector<16x32xbf16>
    %73 = vector.extract_strided_slice %8 {offsets = [576, 0], sizes = [16, 32], strides = [1, 1]} : vector<784x32xbf16> to vector<16x32xbf16>
    %74 = vector.extract_strided_slice %8 {offsets = [592, 0], sizes = [16, 32], strides = [1, 1]} : vector<784x32xbf16> to vector<16x32xbf16>
    %75 = vector.extract_strided_slice %8 {offsets = [672, 0], sizes = [16, 32], strides = [1, 1]} : vector<784x32xbf16> to vector<16x32xbf16>
    %76 = vector.extract_strided_slice %8 {offsets = [688, 0], sizes = [16, 32], strides = [1, 1]} : vector<784x32xbf16> to vector<16x32xbf16>
    %77 = vector.extract_strided_slice %8 {offsets = [704, 0], sizes = [16, 32], strides = [1, 1]} : vector<784x32xbf16> to vector<16x32xbf16>
    %78 = tpu.concatenate %69, %70, %71, %72, %73, %74, %75, %76, %77 in 1 : vector<16x32xbf16>, vector<16x32xbf16>, vector<16x32xbf16>, vector<16x32xbf16>, vector<16x32xbf16>, vector<16x32xbf16>, vector<16x32xbf16>, vector<16x32xbf16>, vector<16x32xbf16> -> vector<16x288xbf16>
    %79 = vector.extract_strided_slice %8 {offsets = [480, 0], sizes = [16, 32], strides = [1, 1]} : vector<784x32xbf16> to vector<16x32xbf16>
    %80 = vector.extract_strided_slice %8 {offsets = [496, 0], sizes = [16, 32], strides = [1, 1]} : vector<784x32xbf16> to vector<16x32xbf16>
    %81 = vector.extract_strided_slice %8 {offsets = [512, 0], sizes = [16, 32], strides = [1, 1]} : vector<784x32xbf16> to vector<16x32xbf16>
    %82 = vector.extract_strided_slice %8 {offsets = [592, 0], sizes = [16, 32], strides = [1, 1]} : vector<784x32xbf16> to vector<16x32xbf16>
    %83 = vector.extract_strided_slice %8 {offsets = [608, 0], sizes = [16, 32], strides = [1, 1]} : vector<784x32xbf16> to vector<16x32xbf16>
    %84 = vector.extract_strided_slice %8 {offsets = [624, 0], sizes = [16, 32], strides = [1, 1]} : vector<784x32xbf16> to vector<16x32xbf16>
    %85 = vector.extract_strided_slice %8 {offsets = [704, 0], sizes = [16, 32], strides = [1, 1]} : vector<784x32xbf16> to vector<16x32xbf16>
    %86 = vector.extract_strided_slice %8 {offsets = [720, 0], sizes = [16, 32], strides = [1, 1]} : vector<784x32xbf16> to vector<16x32xbf16>
    %87 = vector.extract_strided_slice %8 {offsets = [736, 0], sizes = [16, 32], strides = [1, 1]} : vector<784x32xbf16> to vector<16x32xbf16>
    %88 = tpu.concatenate %79, %80, %81, %82, %83, %84, %85, %86, %87 in 1 : vector<16x32xbf16>, vector<16x32xbf16>, vector<16x32xbf16>, vector<16x32xbf16>, vector<16x32xbf16>, vector<16x32xbf16>, vector<16x32xbf16>, vector<16x32xbf16>, vector<16x32xbf16> -> vector<16x288xbf16>
    %89 = vector.extract_strided_slice %8 {offsets = [512, 0], sizes = [16, 32], strides = [1, 1]} : vector<784x32xbf16> to vector<16x32xbf16>
    %90 = vector.extract_strided_slice %8 {offsets = [528, 0], sizes = [16, 32], strides = [1, 1]} : vector<784x32xbf16> to vector<16x32xbf16>
    %91 = vector.extract_strided_slice %8 {offsets = [544, 0], sizes = [16, 32], strides = [1, 1]} : vector<784x32xbf16> to vector<16x32xbf16>
    %92 = vector.extract_strided_slice %8 {offsets = [624, 0], sizes = [16, 32], strides = [1, 1]} : vector<784x32xbf16> to vector<16x32xbf16>
    %93 = vector.extract_strided_slice %8 {offsets = [640, 0], sizes = [16, 32], strides = [1, 1]} : vector<784x32xbf16> to vector<16x32xbf16>
    %94 = vector.extract_strided_slice %8 {offsets = [656, 0], sizes = [16, 32], strides = [1, 1]} : vector<784x32xbf16> to vector<16x32xbf16>
    %95 = vector.extract_strided_slice %8 {offsets = [736, 0], sizes = [16, 32], strides = [1, 1]} : vector<784x32xbf16> to vector<16x32xbf16>
    %96 = vector.extract_strided_slice %8 {offsets = [752, 0], sizes = [16, 32], strides = [1, 1]} : vector<784x32xbf16> to vector<16x32xbf16>
    %97 = vector.extract_strided_slice %8 {offsets = [768, 0], sizes = [16, 32], strides = [1, 1]} : vector<784x32xbf16> to vector<16x32xbf16>
    %98 = tpu.concatenate %89, %90, %91, %92, %93, %94, %95, %96, %97 in 1 : vector<16x32xbf16>, vector<16x32xbf16>, vector<16x32xbf16>, vector<16x32xbf16>, vector<16x32xbf16>, vector<16x32xbf16>, vector<16x32xbf16>, vector<16x32xbf16>, vector<16x32xbf16> -> vector<16x288xbf16>
    %99 = tpu.concatenate %18, %28, %38, %48, %58, %68, %78, %88, %98 in 0 : vector<16x288xbf16>, vector<16x288xbf16>, vector<16x288xbf16>, vector<16x288xbf16>, vector<16x288xbf16>, vector<16x288xbf16>, vector<16x288xbf16>, vector<16x288xbf16>, vector<16x288xbf16> -> vector<144x288xbf16>
    %c0_6 = arith.constant 0 : index
    %c0_7 = arith.constant 0 : index
    %100 = vector.load %arg3[%c0_6, %c0_7] : memref<288x64xbf16, #tpu.memory_space<vmem>>, vector<288x64xbf16>
    %cst_8 = arith.constant dense<0.000000e+00> : vector<144x64xf32>
    %101 = tpu.matmul %99, %100, %cst_8 {dimension_numbers = #tpu.dot_dimension_numbers<[1], [0], [0], [1], [0, 0, 1, 1], [], []>} : vector<144x288xbf16>, vector<288x64xbf16>, vector<144x64xf32> -> vector<144x64xf32>
    %c0_9 = arith.constant 0 : index
    %c0_10 = arith.constant 0 : index
    %102 = vector.load %arg4[%c0_9, %c0_10] : memref<1x64xf32, #tpu.memory_space<vmem>>, vector<1x64xf32>
    %103 = vector.broadcast %102 : vector<1x64xf32> to vector<144x64xf32>
    %104 = arith.addf %101, %103 : vector<144x64xf32>
    %cst_11 = arith.constant 0.000000e+00 : f32
    %105 = vector.broadcast %cst_11 : f32 to vector<144x64xf32>
    %106 = arith.maximumf %104, %105 : vector<144x64xf32>
    %107 = vector.extract_strided_slice %106 {offsets = [0, 0], sizes = [16, 64], strides = [1, 1]} : vector<144x64xf32> to vector<16x64xf32>
    %108 = vector.extract_strided_slice %106 {offsets = [16, 0], sizes = [16, 64], strides = [1, 1]} : vector<144x64xf32> to vector<16x64xf32>
    %109 = vector.extract_strided_slice %106 {offsets = [32, 0], sizes = [16, 64], strides = [1, 1]} : vector<144x64xf32> to vector<16x64xf32>
    %110 = vector.extract_strided_slice %106 {offsets = [48, 0], sizes = [16, 64], strides = [1, 1]} : vector<144x64xf32> to vector<16x64xf32>
    %111 = vector.extract_strided_slice %106 {offsets = [64, 0], sizes = [16, 64], strides = [1, 1]} : vector<144x64xf32> to vector<16x64xf32>
    %112 = vector.extract_strided_slice %106 {offsets = [80, 0], sizes = [16, 64], strides = [1, 1]} : vector<144x64xf32> to vector<16x64xf32>
    %113 = vector.extract_strided_slice %106 {offsets = [96, 0], sizes = [16, 64], strides = [1, 1]} : vector<144x64xf32> to vector<16x64xf32>
    %114 = vector.extract_strided_slice %106 {offsets = [112, 0], sizes = [16, 64], strides = [1, 1]} : vector<144x64xf32> to vector<16x64xf32>
    %115 = vector.extract_strided_slice %106 {offsets = [128, 0], sizes = [16, 64], strides = [1, 1]} : vector<144x64xf32> to vector<16x64xf32>
    %116 = tpu.concatenate %107, %108, %109, %110, %111, %112, %113, %114, %115 in 1 : vector<16x64xf32>, vector<16x64xf32>, vector<16x64xf32>, vector<16x64xf32>, vector<16x64xf32>, vector<16x64xf32>, vector<16x64xf32>, vector<16x64xf32>, vector<16x64xf32> -> vector<16x576xf32>
    %117 = arith.truncf %116 : vector<16x576xf32> to vector<16x576xbf16>
    %c0_12 = arith.constant 0 : index
    %c0_13 = arith.constant 0 : index
    %118 = vector.load %arg5[%c0_12, %c0_13] : memref<576x256xbf16, #tpu.memory_space<vmem>>, vector<576x256xbf16>
    %cst_14 = arith.constant dense<0.000000e+00> : vector<16x256xf32>
    %119 = tpu.matmul %117, %118, %cst_14 {dimension_numbers = #tpu.dot_dimension_numbers<[1], [0], [0], [1], [0, 0, 1, 1], [], []>} : vector<16x576xbf16>, vector<576x256xbf16>, vector<16x256xf32> -> vector<16x256xf32>
    %c0_15 = arith.constant 0 : index
    %c0_16 = arith.constant 0 : index
    %120 = vector.load %arg6[%c0_15, %c0_16] : memref<1x256xf32, #tpu.memory_space<vmem>>, vector<1x256xf32>
    %121 = vector.broadcast %120 : vector<1x256xf32> to vector<16x256xf32>
    %122 = arith.addf %119, %121 : vector<16x256xf32>
    %c0_17 = arith.constant 0 : index
    %c0_18 = arith.constant 0 : index
    %123 = vector.load %arg7[%c0_17, %c0_18] : memref<16x256xf32, #tpu.memory_space<vmem>>, vector<16x256xf32>
    tpu.vector_store %arg7[%c0_17, %c0_18], %122 {strides = array<i32>} : memref<16x256xf32, #tpu.memory_space<vmem>>, vector<16x256xf32>,
    return
  }
}

</mosaic_0001>

<bundles_post_ra>
// kernel: flexible_encoder.1
= control target key start
LH: loop header
LB: loop body
LE: loop exit
PB: predicated region body
PF: predicated region fallthrough
CT: control target
= control target key end

     0   :  { %vm542_vm0 = vcmask 1041408   ;;  %vm394_vm1 = vcmask 293888   ;;  %s3269_s18 = smov 64   ;;  %s3270_s30 = smov 96   ;;  %vm1053_vm2 = vcmask 261120   ;;  %vm1057_vm3 = vcmask 523264   ;;  %s4587_s1 = inlined_call_operand.vmem [shape: bf16[36,32], index: 1, kind: input, shape index: {}]   ;;  %s4588_s2 = inlined_call_operand.vmem [shape: f32[1,32], index: 2, kind: input, shape index: {}]   ;;  %s4589_s0 = inlined_call_operand.vmem [shape: bf16[784,36], index: 0, kind: input, shape index: {}]   ;;  %s4590_s3 = inlined_call_operand.vmem [shape: bf16[288,64], index: 3, kind: input, shape index: {}]   ;;  %s4591_s4 = inlined_call_operand.vmem [shape: f32[1,64], index: 4, kind: input, shape index: {}]   ;;  %s4592_s5 = inlined_call_operand.vmem [shape: bf16[576,256], index: 5, kind: input, shape index: {}]   ;;  %s4593_s6 = inlined_call_operand.vmem [shape: f32[1,256], index: 6, kind: input, shape index: {}]   ;;  %s4594_s7 = inlined_call_operand.vmem [shape: f32[16,256], index: 7, kind: output, shape index: {}]  }
   0x1   :  { %v129_v0 = vld [vmem:[%s4587_s1 + $0x10] sm:$0x3]  ;;  %v3143_v4 = vld [vmem:[%s4587_s1 + $0x8] sm:$0xff]  ;;  %v3142_v5 = vld [vmem:[%s4587_s1] sm:$0xff]  ;;  %s3271_s22 = smov 32   ;;  %vm1060_vm4 = vcmask 785408  }
   0x2   :  { %v388_v1 = vunpack.c.l.b16 %v129_v0  ;;  %v3093_v6 = vld [vmem:[%s4589_s0] sm:$0xff]  ;;  %v3094_v7 = vld [vmem:[%s4589_s0 + $0x8] sm:$0xff]  ;;  %v3095_v8 = vld [vmem:[%s4589_s0 + $0x10] sm:$0xff] }
   0x3   :  { %v3096_v9 = vld [vmem:[%s4589_s0 + $0x18] sm:$0xff]  ;;  %v3097_v10 = vld [vmem:[%s4589_s0 + $0x20] sm:$0xff]  ;;  %v3098_v11 = vld [vmem:[%s4589_s0 + $0x28] sm:$0xff] }
   0x4   :  { %v391_v2 = vpack.c.b16 %v388_v1, %v388_v1  ;;  %v3099_v12 = vld [vmem:[%s4589_s0 + $0x30] sm:$0xff]  ;;  %v3116_v13 = vld [vmem:[%s4589_s0 + $0xb8] sm:$0xff]  ;;  %v3117_v15 = vld [vmem:[%s4589_s0 + $0xc0] sm:$0xff] }
   0x5   :  { %v3100_v14 = vld [vmem:[%s4589_s0 + $0x38] sm:$0xff]  ;;  %v3364_v16 = vld [vmem:[%s4588_s2] ss:$0 sm:$0xff]  ;;  %v3118_v23 = vld [vmem:[%s4589_s0 + $0xc8] sm:$0xff] }
   0x6   :  { %v544_v3 = vsel %vm542_vm0, %v391_v2, 0  ;;  %v3101_v17 = vld [vmem:[%s4589_s0 + $0x40] sm:$0xff]  ;;  %v3102_v29 = vld [vmem:[%s4589_s0 + $0x48] sm:$0xff]  ;;  %v3119_v36 = vld [vmem:[%s4589_s0 + $0xd0] sm:$0xff] }
   0x7   :  { %551 = vmatpush.bf16.msra.mxu0 %v544_v3  ;;  %3234 = vmatpush.bf16.msra.mxu1 %v544_v3  ;;  %v3103_v42 = vld [vmem:[%s4589_s0 + $0x50] sm:$0xff]  ;;  %v3120_v49 = vld [vmem:[%s4589_s0 + $0xd8] sm:$0xff]  ;;  %v3121_v62 = vld [vmem:[%s4589_s0 + $0xe0] sm:$0xff] }
   0x8   :  { %3235 = vmatpush.bf16.msra.mxu2 %v544_v3  ;;  %3236 = vmatpush.bf16.msra.mxu3 %v544_v3  ;;  %v3104_v55 = vld [vmem:[%s4589_s0 + $0x58] sm:$0xff] }
   0xb   :  { %552 = vmatpush.bf16.msra.mxu0 %v3143_v4  ;;  %3237 = vmatpush.bf16.msra.mxu1 %v3143_v4 }
   0xc   :  { %3238 = vmatpush.bf16.msra.mxu2 %v3143_v4  ;;  %3239 = vmatpush.bf16.msra.mxu3 %v3143_v4  ;;  %v3105_v4 = vld [vmem:[%s4589_s0 + $0x60] sm:$0xff] }
   0xf   :  { %553 = vmatpush.bf16.msra.mxu0 %v3142_v5  ;;  %3240 = vmatpush.bf16.msra.mxu1 %v3142_v5 }
  0x10   :  { %3241 = vmatpush.bf16.msra.mxu2 %v3142_v5  ;;  %3242 = vmatpush.bf16.msra.mxu3 %v3142_v5 }
  0x12   :  { %2673 = vmatmul.msk.bf16.vlgmr.msra.gmra.mxu0 %vm394_vm1, %v3093_v6  ;;  %2696 = vmatmul.msk.bf16.vlgmr.msra.gmra.mxu1 %vm394_vm1, %v3116_v13 }
  0x22   :  { %2674 = vmatmul.msk.bf16.gmra.mxu0 %vm394_vm1, %v3094_v7  ;;  %2697 = vmatmul.msk.bf16.gmra.mxu1 %vm394_vm1, %v3117_v15 }
  0x32   :  { %2675 = vmatmul.msk.bf16.gmra.mxu0 %vm394_vm1, %v3095_v8  ;;  %2698 = vmatmul.msk.bf16.gmra.mxu1 %vm394_vm1, %v3118_v23 }
  0x42   :  { %2676 = vmatmul.msk.bf16.gmra.mxu0 %vm394_vm1, %v3096_v9  ;;  %2699 = vmatmul.msk.bf16.gmra.mxu1 %vm394_vm1, %v3119_v36 }
  0x52   :  { %2677 = vmatmul.msk.bf16.gmra.mxu0 %vm394_vm1, %v3097_v10  ;;  %2700 = vmatmul.msk.bf16.gmra.mxu1 %vm394_vm1, %v3120_v49 }
  0x62   :  { %2678 = vmatmul.msk.bf16.gmra.mxu0 %vm394_vm1, %v3098_v11  ;;  %2701 = vmatmul.msk.bf16.gmra.mxu1 %vm394_vm1, %v3121_v62  ;;  %v3122_v11 = vld [vmem:[%s4589_s0 + $0xe8] sm:$0xff]  ;;  %v3125_v62 = vld [vmem:[%s4589_s0 + $0x100] sm:$0xff] }
  0x72   :  { %2679 = vmatmul.msk.bf16.gmra.mxu0 %vm394_vm1, %v3099_v12  ;;  %2702 = vmatmul.msk.bf16.gmra.mxu1 %vm394_vm1, %v3122_v11 }
  0x82   :  { %2680 = vmatmul.msk.bf16.gmra.mxu0 %vm394_vm1, %v3100_v14  ;;  %v3127_v14 = vld [vmem:[%s4589_s0 + $0x110] sm:$0xff] }
  0x83   :  { %2707 = vmatmul.msk.bf16.vlgmr.msra.gmra.mxu2 %vm394_vm1, %v3127_v14 }
  0x8f   :  { %v555_v18 = vpop.f32.mrf.mxu0 }
  0x90   :  { %v556_v19 = vadd.f32 %v3364_v16, %v555_v18 }
  0x92   :  { %2681 = vmatmul.msk.bf16.gmra.mxu0 %vm394_vm1, %v3101_v17  ;;  %v800_v20 = vmax.f32 %v556_v19, 0.0  ;;  %v3106_v19 = vld [vmem:[%s4589_s0 + $0x68] sm:$0xff] }
  0x94   :  { %v898_v24 = vpack.c.bf16 %v800_v20, %v800_v20 }
  0x96   :  { %v998_v27 = vunpack.c.l.b16 %v898_v24 }
  0x97   :  { %v557_v21 = vpop.f32.mrf.mxu0 }
  0x98   :  { %v558_v22 = vadd.f32 %v3364_v16, %v557_v21 }
  0x9a   :  { %v801_v25 = vmax.f32 %v558_v22, 0.0 }
  0x9c   :  { %v899_v26 = vpack.c.bf16 %v801_v25, %v801_v25 }
  0x9e   :  { %v999_v28 = vunpack.c.l.b16 %v899_v26  ;;  %v3123_v26 = vld [vmem:[%s4589_s0 + $0xf0] sm:$0xff] }
  0x9f   :  { %v560_v30 = vpop.f32.mrf.mxu0  ;;  %2703 = vmatmul.msk.bf16.gmra.mxu1 %vm394_vm1, %v3123_v26  ;;  %v3110_v26 = vld [vmem:[%s4589_s0 + $0x88] sm:$0xff] }
  0xa0   :  { %v3379_v31 = vpack.c.b16 %v999_v28, %v998_v27  ;;  %v561_v32 = vadd.f32 %v3364_v16, %v560_v30  ;;  %v3134_v30 = vld [vmem:[%s4589_s0 + $0x148] sm:$0xff] }
  0xa1   :  { %2714 = vmatmul.msk.bf16.vlgmr.msra.gmra.mxu3 %vm394_vm1, %v3134_v30 }
  0xa2   :  { %2682 = vmatmul.msk.bf16.gmra.mxu0 %vm394_vm1, %v3102_v29  ;;  %v802_v33 = vmax.f32 %v561_v32, 0.0  ;;  %v3128_v29 = vld [vmem:[%s4589_s0 + $0x118] sm:$0xff] }
  0xa3   :  { %2708 = vmatmul.msk.bf16.gmra.mxu2 %vm394_vm1, %v3128_v29 }
  0xa4   :  { %v900_v37 = vpack.c.bf16 %v802_v33, %v802_v33 }
  0xa6   :  { %v1003_v40 = vunpack.c.l.b16 %v900_v37 }
  0xa7   :  { %v562_v34 = vpop.f32.mrf.mxu0 }
  0xa8   :  { %v563_v35 = vadd.f32 %v3364_v16, %v562_v34 }
  0xaa   :  { %v803_v38 = vmax.f32 %v563_v35, 0.0  ;;  %v3107_v35 = vld [vmem:[%s4589_s0 + $0x70] sm:$0xff] }
  0xac   :  { %v901_v39 = vpack.c.bf16 %v803_v38, %v803_v38 }
  0xae   :  { %v1004_v41 = vunpack.c.l.b16 %v901_v39 }
  0xaf   :  { %v565_v43 = vpop.f32.mrf.mxu0 }
  0xb0   :  { %v3391_v44 = vpack.c.b16 %v1004_v41, %v1003_v40  ;;  %v566_v45 = vadd.f32 %v3364_v16, %v565_v43  ;;  %v3457_v41 = vpop.f32.mrf.mxu1  ;;  %v3124_v43 = vld [vmem:[%s4589_s0 + $0xf8] sm:$0xff] }
  0xb1   :  { %2704 = vmatmul.msk.bf16.gmra.mxu1 %vm394_vm1, %v3124_v43 }
  0xb2   :  { %2683 = vmatmul.msk.bf16.gmra.mxu0 %vm394_vm1, %v3103_v42  ;;  %v804_v46 = vmax.f32 %v566_v45, 0.0 }
  0xb4   :  { %v902_v50 = vpack.c.bf16 %v804_v46, %v804_v46 }
  0xb6   :  { %v1010_v53 = vunpack.c.l.b16 %v902_v50 }
  0xb7   :  { %v567_v47 = vpop.f32.mrf.mxu0 }
  0xb8   :  { %v568_v48 = vadd.f32 %v3364_v16, %v567_v47  ;;  %v3129_v47 = vld [vmem:[%s4589_s0 + $0x120] sm:$0xff] }
  0xb9   :  { %2709 = vmatmul.msk.bf16.gmra.mxu2 %vm394_vm1, %v3129_v47 }
  0xba   :  { %v805_v51 = vmax.f32 %v568_v48, 0.0  ;;  %v3135_v48 = vld [vmem:[%s4589_s0 + $0x150] sm:$0xff] }
  0xbb   :  { %2715 = vmatmul.msk.bf16.gmra.mxu3 %vm394_vm1, %v3135_v48 }
  0xbc   :  { %v903_v52 = vpack.c.bf16 %v805_v51, %v805_v51 }
  0xbe   :  { %v1011_v54 = vunpack.c.l.b16 %v903_v52  ;;  %v3108_v52 = vld [vmem:[%s4589_s0 + $0x78] sm:$0xff] }
  0xbf   :  { %v570_v56 = vpop.f32.mrf.mxu0 }
  0xc0   :  { %v3403_v57 = vpack.c.b16 %v1011_v54, %v1010_v53  ;;  %v571_v58 = vadd.f32 %v3364_v16, %v570_v56  ;;  %v3475_v54 = vpop.f32.mrf.mxu1 }
  0xc1   :  { %2705 = vmatmul.msk.bf16.gmra.mxu1 %vm394_vm1, %v3125_v62 }
  0xc2   :  { %2684 = vmatmul.msk.bf16.gmra.mxu0 %vm394_vm1, %v3104_v55  ;;  %1013 = vrot.lane.b32.xlu2 %v3403_v57, %s3269_s18  ;;  %v806_v59 = vmax.f32 %v571_v58, 0.0 }
  0xc4   :  { %v904_v63 = vpack.c.bf16 %v806_v59, %v806_v59 }
  0xc6   :  { %v1074_v2 = vunpack.c.l.b16 %v904_v63 }
  0xc7   :  { %v572_v60 = vpop.f32.mrf.mxu0 }
  0xc8   :  { %v573_v61 = vadd.f32 %v3364_v16, %v572_v60  ;;  %v3481_v60 = vpop.f32.mrf.mxu1 }
  0xca   :  { %v807_v0 = vmax.f32 %v573_v61, 0.0 }
  0xcc   :  { %v905_v1 = vpack.c.bf16 %v807_v0, %v807_v0 }
  0xce   :  { %v1075_v3 = vunpack.c.l.b16 %v905_v1  ;;  %v3130_v1 = vld [vmem:[%s4589_s0 + $0x128] sm:$0xff] }
  0xcf   :  { %v575_v5 = vpop.f32.mrf.mxu0  ;;  %2710 = vmatmul.msk.bf16.gmra.mxu2 %vm394_vm1, %v3130_v1  ;;  %v3112_v1 = vld [vmem:[%s4589_s0 + $0x98] sm:$0xff] }
  0xd0   :  { %v3417_v6 = vpack.c.b16 %v1075_v3, %v1074_v2  ;;  %v576_v7 = vadd.f32 %v3364_v16, %v575_v5  ;;  %v3136_v2 = vld [vmem:[%s4589_s0 + $0x158] sm:$0xff] }
  0xd1   :  { %2716 = vmatmul.msk.bf16.gmra.mxu3 %vm394_vm1, %v3136_v2 }
  0xd2   :  { %2685 = vmatmul.msk.bf16.gmra.mxu0 %vm394_vm1, %v3105_v4  ;;  %v808_v8 = vmax.f32 %v576_v7, 0.0  ;;  %v3109_v7 = vld [vmem:[%s4589_s0 + $0x80] sm:$0xff] }
  0xd4   :  { %v906_v12 = vpack.c.bf16 %v808_v8, %v808_v8 }
  0xd6   :  { %v1081_v17 = vunpack.c.l.b16 %v906_v12 }
  0xd7   :  { %v577_v9 = vpop.f32.mrf.mxu0 }
  0xd8   :  { %v578_v10 = vadd.f32 %v3364_v16, %v577_v9  ;;  %v3499_v9 = vpop.f32.mrf.mxu1 }
  0xda   :  { %v809_v13 = vmax.f32 %v578_v10, 0.0 }
  0xdc   :  { %v907_v15 = vpack.c.bf16 %v809_v13, %v809_v13 }
  0xde   :  { %v1082_v18 = vunpack.c.l.b16 %v907_v15 }
  0xdf   :  { %v580_v20 = vpop.f32.mrf.mxu0 }
  0xe0   :  { %v3433_v21 = vpack.c.b16 %v1082_v18, %v1081_v17  ;;  %v581_v22 = vadd.f32 %v3364_v16, %v580_v20  ;;  %v3504_v14 = vpop.f32.mrf.mxu1  ;;  %v3126_v17 = vld [vmem:[%s4589_s0 + $0x108] sm:$0xff]  ;;  %v3131_v20 = vld [vmem:[%s4589_s0 + $0x130] sm:$0xff] }
  0xe1   :  { %2706 = vmatmul.msk.bf16.gmra.mxu1 %vm394_vm1, %v3126_v17  ;;  %2711 = vmatmul.msk.bf16.gmra.mxu2 %vm394_vm1, %v3131_v20 }
  0xe2   :  { %2686 = vmatmul.msk.bf16.gmra.mxu0 %vm394_vm1, %v3106_v19  ;;  %v810_v23 = vmax.f32 %v581_v22, 0.0  ;;  %v3137_v22 = vld [vmem:[%s4589_s0 + $0x160] sm:$0xff] }
  0xe3   :  { %2717 = vmatmul.msk.bf16.gmra.mxu3 %vm394_vm1, %v3137_v22 }
  0xe4   :  { %v908_v27 = vpack.c.bf16 %v810_v23, %v810_v23 }
  0xe6   :  { %v1132_v33 = vunpack.c.l.b16 %v908_v27 }
  0xe7   :  { %v582_v24 = vpop.f32.mrf.mxu0 }
  0xe8   :  { %v583_v25 = vadd.f32 %v3364_v16, %v582_v24 }
  0xea   :  { %v811_v28 = vmax.f32 %v583_v25, 0.0 }
  0xec   :  { %v909_v32 = vpack.c.bf16 %v811_v28, %v811_v28  ;;  %v3522_v28 = vpop.f32.mrf.mxu1 }
  0xee   :  { %v1133_v34 = vunpack.c.l.b16 %v909_v32 }
  0xef   :  { %v585_v36 = vpop.f32.mrf.mxu0 }
  0xf0   :  { %v3453_v37 = vpack.c.b16 %v1133_v34, %v1132_v33  ;;  %v586_v38 = vadd.f32 %v3364_v16, %v585_v36 }
  0xf2   :  { %2687 = vmatmul.msk.bf16.gmra.mxu0 %vm394_vm1, %v3107_v35  ;;  %v812_v39 = vmax.f32 %v586_v38, 0.0 }
  0xf4   :  { %v910_v45 = vpack.c.bf16 %v812_v39, %v812_v39  ;;  %v3528_v34 = vpop.f32.mrf.mxu1  ;;  %v3132_v39 = vld [vmem:[%s4589_s0 + $0x138] sm:$0xff] }
  0xf5   :  { %2712 = vmatmul.msk.bf16.gmra.mxu2 %vm394_vm1, %v3132_v39 }
  0xf6   :  { %v1139_v50 = vunpack.c.l.b16 %v910_v45 }
  0xf7   :  { %v587_v40 = vpop.f32.mrf.mxu0 }
  0xf8   :  { %v588_v42 = vadd.f32 %v3364_v16, %v587_v40  ;;  %v3138_v40 = vld [vmem:[%s4589_s0 + $0x168] sm:$0xff] }
  0xf9   :  { %2718 = vmatmul.msk.bf16.gmra.mxu3 %vm394_vm1, %v3138_v40  ;;  %v3115_v40 = vld [vmem:[%s4589_s0 + $0xb0] sm:$0xff] }
  0xfa   :  { %v813_v46 = vmax.f32 %v588_v42, 0.0 }
  0xfc   :  { %v911_v49 = vpack.c.bf16 %v813_v46, %v813_v46  ;;  %v3111_v46 = vld [vmem:[%s4589_s0 + $0x90] sm:$0xff]  ;;  %v3542_v48 = vpop.f32.mrf.mxu1 }
  0xfe   :  { %v1140_v51 = vunpack.c.l.b16 %v911_v49 }
  0xff   :  { %v590_v53 = vpop.f32.mrf.mxu0 }
 0x100   :  { %v3477_v55 = vpack.c.b16 %v1140_v51, %v1139_v50  ;;  %v591_v56 = vadd.f32 %v3364_v16, %v590_v53 }
 0x102   :  { %2688 = vmatmul.msk.bf16.gmra.mxu0 %vm394_vm1, %v3108_v52  ;;  %v814_v58 = vmax.f32 %v591_v56, 0.0 }
 0x104   :  { %v912_v63 = vpack.c.bf16 %v814_v58, %v814_v58  ;;  %v3550_v53 = vpop.f32.mrf.mxu1 }
 0x106   :  { %v1017_v4 = vunpack.c.l.b16 %v912_v63 }
 0x107   :  { %v592_v59 = vpop.f32.mrf.mxu0 }
 0x108   :  { %v593_v61 = vadd.f32 %v3364_v16, %v592_v59 }
 0x10a   :  { %v815_v0 = vmax.f32 %v593_v61, 0.0  ;;  %v3139_v61 = vld [vmem:[%s4589_s0 + $0x170] sm:$0xff] }
 0x10b   :  { %2719 = vmatmul.msk.bf16.gmra.mxu3 %vm394_vm1, %v3139_v61  ;;  %v3161_v61 = vld [vmem:[%s4590_s3 + $0x88] sm:$0xff] }
 0x10c   :  { %v913_v3 = vpack.c.bf16 %v815_v0, %v815_v0  ;;  %1769 = vmatpush.bf16.msrb.mxu3 %v3161_v61 }
 0x10e   :  { %v1018_v5 = vunpack.c.l.b16 %v913_v3  ;;  %v3560_v3 = vpop.f32.mrf.mxu1 }
 0x10f   :  { %v595_v8 = vpop.f32.mrf.mxu0 }
 0x110   :  { %v1019_v10 = vpack.c.b16 %v1018_v5, %v1017_v4  ;;  %v596_v11 = vadd.f32 %v3364_v16, %v595_v8  ;;  %v3113_v8 = vld [vmem:[%s4589_s0 + $0xa0] sm:$0xff] }
 0x112   :  { %2689 = vmatmul.msk.bf16.gmra.mxu0 %vm394_vm1, %v3109_v7  ;;  %1020 = vrot.lane.b32.xlu2 %v1019_v10, %s3270_s30  ;;  %v816_v12 = vmax.f32 %v596_v11, 0.0 }
 0x114   :  { %v914_v18 = vpack.c.bf16 %v816_v12, %v816_v12 }
 0x116   :  { %v1024_v24 = vunpack.c.l.b16 %v914_v18  ;;  %v3565_v7 = vpop.f32.mrf.mxu1 }
 0x117   :  { %v597_v13 = vpop.f32.mrf.mxu0 }
 0x118   :  { %v598_v15 = vadd.f32 %v3364_v16, %v597_v13 }
 0x11a   :  { %v817_v19 = vmax.f32 %v598_v15, 0.0 }
 0x11c   :  { %v915_v23 = vpack.c.bf16 %v817_v19, %v817_v19 }
 0x11e   :  { %v1025_v25 = vunpack.c.l.b16 %v915_v23  ;;  %v3570_v11 = vpop.f32.mrf.mxu1 }
 0x11f   :  { %v600_v27 = vpop.f32.mrf.mxu0 }
 0x120   :  { %v3524_v29 = vpack.c.b16 %v1025_v25, %v1024_v24  ;;  %v601_v30 = vadd.f32 %v3364_v16, %v600_v27  ;;  %v3114_v25 = vld [vmem:[%s4589_s0 + $0xa8] sm:$0xff] }
 0x122   :  { %2690 = vmatmul.msk.bf16.gmra.mxu0 %vm394_vm1, %v3110_v26  ;;  %v818_v32 = vmax.f32 %v601_v30, 0.0  ;;  %v3582_v30 = vpop.f32.mrf.mxu2 }
 0x124   :  { %v916_v36 = vpack.c.bf16 %v818_v32, %v818_v32  ;;  %v3140_v32 = vld [vmem:[%s4589_s0 + $0x178] sm:$0xff] }
 0x125   :  { %2720 = vmatmul.msk.bf16.gmra.mxu3 %vm394_vm1, %v3140_v32 }
 0x126   :  { %v1029_v43 = vunpack.c.l.b16 %v916_v36  ;;  %v3575_v18 = vpop.f32.mrf.mxu1 }
 0x127   :  { %v602_v33 = vpop.f32.mrf.mxu0 }
 0x128   :  { %v603_v35 = vadd.f32 %v3364_v16, %v602_v33 }
 0x12a   :  { %v819_v38 = vmax.f32 %v603_v35, 0.0  ;;  %v3151_v35 = vld [vmem:[%s4590_s3 + $0x38] sm:$0xff] }
 0x12b   :  { %1655 = vmatpush.bf16.msrb.mxu1 %v3151_v35 }
 0x12c   :  { %v917_v42 = vpack.c.bf16 %v819_v38, %v819_v38  ;;  %v3594_v38 = vpop.f32.mrf.mxu2 }
 0x12e   :  { %v1030_v45 = vunpack.c.l.b16 %v917_v42  ;;  %v3588_v33 = vpop.f32.mrf.mxu1 }
 0x12f   :  { %v605_v47 = vpop.f32.mrf.mxu0 }
 0x130   :  { %v3544_v49 = vpack.c.b16 %v1030_v45, %v1029_v43  ;;  %v606_v50 = vadd.f32 %v3364_v16, %v605_v47  ;;  %v3603_v45 = vpop.f32.mrf.mxu3 }
 0x132   :  { %2691 = vmatmul.msk.bf16.gmra.mxu0 %vm394_vm1, %v3111_v46  ;;  %1032 = vrot.lane.b32.xlu0 %v3544_v49, %s3271_s22  ;;  %v820_v51 = vmax.f32 %v606_v50, 0.0  ;;  %v3141_v46 = vld [vmem:[%s4589_s0 + $0x180] sm:$0xff] }
 0x134   :  { %v918_v58 = vpack.c.bf16 %v820_v51, %v820_v51  ;;  %v3601_v43 = vpop.f32.mrf.mxu2 }
 0x135   :  { %2721 = vmatmul.msk.bf16.gmra.mxu3 %vm394_vm1, %v3141_v46 }
 0x136   :  { %v1090_v63 = vunpack.c.l.b16 %v918_v58  ;;  %v3596_v39 = vpop.f32.mrf.mxu1 }
 0x137   :  { %v607_v52 = vpop.f32.mrf.mxu0 }
 0x138   :  { %v608_v56 = vadd.f32 %v3364_v16, %v607_v52 }
 0x13a   :  { %v821_v59 = vmax.f32 %v608_v56, 0.0 }
 0x13c   :  { %v919_v62 = vpack.c.bf16 %v821_v59, %v821_v59  ;;  %v3615_v59 = vpop.f32.mrf.mxu3 }
 0x13e   :  { %v1091_v0 = vunpack.c.l.b16 %v919_v62  ;;  %v3611_v51 = vpop.f32.mrf.mxu1 }
 0x13f   :  { %v610_v2 = vpop.f32.mrf.mxu0 }
 0x140   :  { %v3562_v4 = vpack.c.b16 %v1091_v0, %v1090_v63  ;;  %v611_v62 = vadd.f32 %v3364_v16, %v610_v2 }
 0x142   :  { %2692 = vmatmul.msk.bf16.gmra.mxu0 %vm394_vm1, %v3112_v1  ;;  %v3621_v1 = vpop.f32.mrf.mxu2 }
 0x146   :  { %v3628_v2 = vpop.f32.mrf.mxu1 }
 0x147   :  { %v612_v5 = vpop.f32.mrf.mxu0 }
 0x148   :  { %v613_v56 = vadd.f32 %v3364_v16, %v612_v5  ;;  %v3160_v5 = vld [vmem:[%s4590_s3 + $0x80] sm:$0xff] }
 0x149   :  { %1770 = vmatpush.bf16.msrb.mxu3 %v3160_v5 }
 0x14a   :  { %v3638_v35 = vpop.f32.mrf.mxu2 }
 0x14f   :  { %v615_v10 = vpop.f32.mrf.mxu0 }
 0x150   :  { %v616_v12 = vadd.f32 %v3364_v16, %v615_v10 }
 0x152   :  { %2693 = vmatmul.msk.bf16.gmra.mxu0 %vm394_vm1, %v3113_v8  ;;  %v824_v13 = vmax.f32 %v616_v12, 0.0  ;;  %v823_v8 = vmax.f32 %v613_v56, 0.0  ;;  %v822_v12 = vmax.f32 %v611_v62, 0.0  ;;  %v3647_v62 = vpop.f32.mrf.mxu1 }
 0x154   :  { %v922_v19 = vpack.c.bf16 %v824_v13, %v824_v13 }
 0x156   :  { %v1148_v23 = vunpack.c.l.b16 %v922_v19  ;;  %v921_v19 = vpack.c.bf16 %v823_v8, %v823_v8 }
 0x157   :  { %v617_v15 = vpop.f32.mrf.mxu0 }
 0x158   :  { %v618_v17 = vadd.f32 %v3364_v16, %v617_v15  ;;  %v1096_v32 = vunpack.c.l.b16 %v921_v19 }
 0x15a   :  { %v825_v20 = vmax.f32 %v618_v17, 0.0 }
 0x15c   :  { %v923_v22 = vpack.c.bf16 %v825_v20, %v825_v20 }
 0x15e   :  { %v1149_v24 = vunpack.c.l.b16 %v923_v22  ;;  %v3150_v22 = vld [vmem:[%s4590_s3 + $0x30] sm:$0xff] }
 0x15f   :  { %v620_v26 = vpop.f32.mrf.mxu0  ;;  %1656 = vmatpush.bf16.msrb.mxu1 %v3150_v22 }
 0x160   :  { %v3580_v27 = vpack.c.b16 %v1149_v24, %v1148_v23  ;;  %v3633_v23 = vpop.f32.mrf.mxu3  ;;  %v920_v24 = vpack.c.bf16 %v822_v12, %v822_v12  ;;  %v621_v56 = vadd.f32 %v3364_v16, %v620_v26  ;;  %v3651_v12 = vpop.f32.mrf.mxu2 }
 0x161   :  { %4596 = vst [vmem:[#allocation2_spill] sm:$0xff] %v3651_v12 }
 0x162   :  { %2694 = vmatmul.msk.bf16.gmra.mxu0 %vm394_vm1, %v3114_v25 }
 0x167   :  { %v622_v36 = vpop.f32.mrf.mxu0 }
 0x16f   :  { %v625_v42 = vpop.f32.mrf.mxu0 }
 0x170   :  { %v626_v47 = vadd.f32 %v3364_v16, %v625_v42 }
 0x172   :  { %2695 = vmatmul.msk.bf16.gmra.mxu0 %vm394_vm1, %v3115_v40  ;;  %v828_v50 = vmax.f32 %v626_v47, 0.0  ;;  %v1095_v40 = vunpack.c.l.b16 %v920_v24  ;;  %v623_v47 = vadd.f32 %v3364_v16, %v622_v36  ;;  %v3660_v24 = vpop.f32.mrf.mxu1 }
 0x174   :  { %v926_v63 = vpack.c.bf16 %v828_v50, %v828_v50 }
 0x176   :  { %v1036_v13 = vunpack.c.l.b16 %v926_v63  ;;  %v3649_v63 = vpop.f32.mrf.mxu3 }
 0x177   :  { %v627_v52 = vpop.f32.mrf.mxu0 }
 0x178   :  { %v628_v58 = vadd.f32 %v3364_v16, %v627_v52  ;;  %v3642_v52 = vpack.c.b16 %v1096_v32, %v1095_v40 }
 0x17a   :  { %v829_v0 = vmax.f32 %v628_v58, 0.0 }
 0x17c   :  { %v927_v10 = vpack.c.bf16 %v829_v0, %v829_v0  ;;  %v827_v0 = vmax.f32 %v623_v47, 0.0  ;;  %v671_v47 = vadd.f32 %v3364_v16, %v3457_v41 }
 0x17e   :  { %v1037_v15 = vunpack.c.l.b16 %v927_v10  ;;  %v826_v10 = vmax.f32 %v621_v56, 0.0 }
 0x17f   :  { %v630_v17 = vpop.f32.mrf.mxu0 }
 0x180   :  { %v3626_v20 = vpack.c.b16 %v1037_v15, %v1036_v13  ;;  %v631_v25 = vadd.f32 %v3364_v16, %v630_v17  ;;  %v925_v15 = vpack.c.bf16 %v827_v0, %v827_v0  ;;  %v924_v26 = vpack.c.bf16 %v826_v10, %v826_v10 }
 0x182   :  { %1039 = vrot.lane.b32.xlu0 %v3626_v20, %s3269_s18  ;;  %v830_v42 = vmax.f32 %v631_v25, 0.0  ;;  %v1154_v22 = vunpack.c.l.b16 %v925_v15  ;;  %v3662_v25 = vpop.f32.mrf.mxu3  ;;  %v1153_v32 = vunpack.c.l.b16 %v924_v26 }
 0x184   :  { %v928_v58 = vpack.c.bf16 %v830_v42, %v830_v42  ;;  %v3149_v42 = vld [vmem:[%s4590_s3 + $0x28] sm:$0xff]  ;;  %v1155_v56 = vpack.c.b16 %v1154_v22, %v1153_v32 }
 0x185   :  { %1657 = vmatpush.bf16.msrb.mxu1 %v3149_v42 }
 0x186   :  { %v1043_v5 = vunpack.c.l.b16 %v928_v58  ;;  %v3672_v58 = vpop.f32.mrf.mxu2 }
 0x187   :  { %v632_v46 = vpop.f32.mrf.mxu0 }
 0x188   :  { %v633_v50 = vadd.f32 %v3364_v16, %v632_v46 }
 0x18a   :  { %v831_v61 = vmax.f32 %v633_v50, 0.0  ;;  %1098 = vrot.lane.b32.xlu0 %v3642_v52, %s3271_s22  ;;  %v673_v50 = vadd.f32 %v3364_v16, %v3475_v54  ;;  %v3679_v15 = vpop.f32.mrf.mxu3 }
 0x18c   :  { %v929_v8 = vpack.c.bf16 %v831_v61, %v831_v61  ;;  %v847_v10 = vmax.f32 %v673_v50, 0.0 }
 0x18e   :  { %v1044_v36 = vunpack.c.l.b16 %v929_v8  ;;  %v846_v8 = vmax.f32 %v671_v47, 0.0  ;;  %v708_v47 = vadd.f32 %v3364_v16, %v3611_v51 }
 0x18f   :  { %v635_v13 = vpop.f32.mrf.mxu0 }
 0x190   :  { %v3653_v17 = vpack.c.b16 %v1044_v36, %v1043_v5  ;;  %v636_v19 = vadd.f32 %v3364_v16, %v635_v13  ;;  %v3677_v13 = vpop.f32.mrf.mxu1  ;;  %v944_v26 = vpack.c.bf16 %v846_v8, %v846_v8 }
 0x192   :  { %1046 = vrot.lane.b32.xlu1 %v3653_v17, %s3270_s30  ;;  %1077 = vrot.lane.b32.xlu0 %v3417_v6, %s3271_s22  ;;  %v832_v40 = vmax.f32 %v636_v19, 0.0  ;;  %v945_v19 = vpack.c.bf16 %v847_v10, %v847_v10  ;;  %v3702_v8 = vpop.f32.mrf.mxu3 }
 0x194   :  { %v930_v61 = vpack.c.bf16 %v832_v40, %v832_v40  ;;  %v1204_v40 = vunpack.c.l.b16 %v944_v26  ;;  %v1205_v42 = vunpack.c.l.b16 %v945_v19 }
 0x196   :  { %v1050_v41 = vunpack.c.l.b16 %v930_v61  ;;  %v3700_v61 = vpack.c.b16 %v1205_v42, %v1204_v40  ;;  %v3148_v40 = vld [vmem:[%s4590_s3 + $0x20] sm:$0xff] }
 0x197   :  { %v637_v46 = vpop.f32.mrf.mxu0  ;;  %1658 = vmatpush.bf16.msrb.mxu1 %v3148_v40 }
 0x198   :  { %v638_v6 = vadd.f32 %v3364_v16, %v637_v46  ;;  %v706_v46 = vadd.f32 %v3364_v16, %v3596_v39 }
 0x19a   :  { %v833_v0 = vmax.f32 %v638_v6, 0.0  ;;  %1156 = vrot.lane.b32.xlu0 %v1155_v56, %s3271_s22  ;;  %1006 = vrot.lane.b32.xlu1 %v3391_v44, %s3271_s22  ;;  %v3688_v44 = vpop.f32.mrf.mxu2  ;;  %v3159_v6 = vld [vmem:[%s4590_s3 + $0x78] sm:$0xff]  ;;  %v860_v10 = vmax.f32 %v706_v46, 0.0 }
 0x19b   :  { %1709 = vmatpush.bf16.msrb.mxu2 %v3159_v6 }
 0x19c   :  { %v931_v5 = vpack.c.bf16 %v833_v0, %v833_v0  ;;  %v720_v0 = vpop.f32.mrf.mxu1 }
 0x19e   :  { %v1051_v36 = vunpack.c.l.b16 %v931_v5  ;;  %v861_v5 = vmax.f32 %v708_v47, 0.0 }
 0x19f   :  { %v640_v54 = vpop.f32.mrf.mxu0 }
 0x1a0   :  { %v3681_v22 = vpack.c.b16 %v1051_v36, %v1050_v41  ;;  %v641_v32 = vadd.f32 %v3364_v16, %v640_v54  ;;  %v958_v54 = vpack.c.bf16 %v860_v10, %v860_v10  ;;  %v959_v26 = vpack.c.bf16 %v861_v5, %v861_v5 }
 0x1a1   :  { %v721_v5 = vadd.f32 %v3364_v16, %v720_v0 }
 0x1a2   :  { %2794 = vmatmul.msk.bf16.vlgmr.msrb.gmra.mxu3 %vm1053_vm2, %v3681_v22  ;;  %1135 = vrot.lane.b32.xlu0 %v3453_v37, %s3271_s22  ;;  %v834_v50 = vmax.f32 %v641_v32, 0.0  ;;  %v3708_v36 = vpop.f32.mrf.mxu2  ;;  %v1225_v47 = vunpack.c.l.b16 %v958_v54  ;;  %v3158_v54 = vld [vmem:[%s4590_s3 + $0x70] sm:$0xff] }
 0x1a3   :  { %1100 = vrot.lane.b32.xlu1 %v3681_v22, %s3269_s18  ;;  %4597 = vst [vmem:[#allocation3_spill] sm:$0xff] %v3708_v36  ;;  %1710 = vmatpush.bf16.msrb.mxu2 %v3158_v54  ;;  %v866_v40 = vmax.f32 %v721_v5, 0.0  ;;  %v3157_v5 = vld [vmem:[%s4590_s3 + $0x68] sm:$0xff] }
 0x1a4   :  { %v932_v39 = vpack.c.bf16 %v834_v50, %v834_v50  ;;  %v1226_v50 = vunpack.c.l.b16 %v959_v26 }
 0x1a6   :  { %v1104_v19 = vunpack.c.l.b16 %v932_v39  ;;  %v3723_v39 = vpack.c.b16 %v1226_v50, %v1225_v47 }
 0x1a7   :  { %v642_v56 = vpop.f32.mrf.mxu0  ;;  %1711 = vmatpush.bf16.msrb.mxu2 %v3157_v5 }
 0x1a8   :  { %v643_v37 = vadd.f32 %v3364_v16, %v642_v56  ;;  %v722_v56 = vpop.f32.mrf.mxu1 }
 0x1aa   :  { %v835_v41 = vmax.f32 %v643_v37, 0.0  ;;  %1207 = vrot.lane.b32.xlu0 %v3700_v61, %s3271_s22  ;;  %v3720_v37 = vpop.f32.mrf.mxu3 }
 0x1ab   :  { %1084 = vrot.lane.b32.xlu1 %v3433_v21, %s3269_s18 }
 0x1ac   :  { %v933_v51 = vpack.c.bf16 %v835_v41, %v835_v41  ;;  %v723_v41 = vadd.f32 %v3364_v16, %v722_v56  ;;  %v964_v56 = vpack.c.bf16 %v866_v40, %v866_v40 }
 0x1ae   :  { %v1105_v32 = vunpack.c.l.b16 %v933_v51  ;;  %v3726_v51 = vpop.f32.mrf.mxu2  ;;  %v867_v0 = vmax.f32 %v723_v41, 0.0  ;;  %v683_v41 = vadd.f32 %v3364_v16, %v3522_v28  ;;  %v1310_v40 = vunpack.c.l.b16 %v964_v56 }
 0x1af   :  { %v645_v42 = vpop.f32.mrf.mxu0  ;;  %4598 = vst [vmem:[#allocation4_spill] sm:$0xff] %v3726_v51 }
 0x1b0   :  { %v3713_v46 = vpack.c.b16 %v1105_v32, %v1104_v19  ;;  %v646_v6 = vadd.f32 %v3364_v16, %v645_v42  ;;  %v965_v51 = vpack.c.bf16 %v867_v0, %v867_v0  ;;  %v851_v28 = vmax.f32 %v683_v41, 0.0 }
 0x1b2   :  { %1188 = vrot.lane.b32.xlu0 %v3653_v17, %s3271_s22  ;;  %1107 = vrot.lane.b32.xlu2 %v3713_v46, %s3270_s30  ;;  %v836_v10 = vmax.f32 %v646_v6, 0.0  ;;  %v3736_v47 = vpop.f32.mrf.mxu3 }
 0x1b4   :  { %v934_v19 = vpack.c.bf16 %v836_v10, %v836_v10  ;;  %v3147_v10 = vld [vmem:[%s4590_s3 + $0x18] sm:$0xff] }
 0x1b5   :  { %1659 = vmatpush.bf16.msrb.mxu1 %v3147_v10 }
 0x1b6   :  { %v1111_v50 = vunpack.c.l.b16 %v934_v19  ;;  %v696_v19 = vadd.f32 %v3364_v16, %v3565_v7 }
 0x1b7   :  { %v647_v17 = vpop.f32.mrf.mxu0 }
 0x1b8   :  { %v648_v26 = vadd.f32 %v3364_v16, %v647_v17 }
 0x1ba   :  { %v837_v32 = vmax.f32 %v648_v26, 0.0  ;;  %1259 = vrot.lane.b32.xlu0 %v3723_v39, %s3269_s18  ;;  %1086 = vrot.lane.b32.xlu2 %v3544_v49, %s3270_s30  ;;  %v681_v49 = vadd.f32 %v3364_v16, %v3504_v14  ;;  %v750_v26 = vpop.f32.mrf.mxu2  ;;  %v3770_v5 = vpop.f32.mrf.mxu3 }
 0x1bc   :  { %v935_v42 = vpack.c.bf16 %v837_v32, %v837_v32  ;;  %v698_v32 = vadd.f32 %v3364_v16, %v3570_v11  ;;  %v850_v14 = vmax.f32 %v681_v49, 0.0  ;;  %v771_v11 = vadd.f32 %v3364_v16, %v3662_v25 }
 0x1bd   :  { %v949_v49 = vpack.c.bf16 %v851_v28, %v851_v28 }
 0x1be   :  { %v1112_v6 = vunpack.c.l.b16 %v935_v42  ;;  %v1311_v42 = vunpack.c.l.b16 %v965_v51  ;;  %v857_v7 = vmax.f32 %v698_v32, 0.0  ;;  %v886_v32 = vmax.f32 %v771_v11, 0.0 }
 0x1bf   :  { %v650_v54 = vpop.f32.mrf.mxu0 }
 0x1c0   :  { %v3748_v17 = vpack.c.b16 %v1112_v6, %v1111_v50  ;;  %v651_v0 = vadd.f32 %v3364_v16, %v650_v54  ;;  %v856_v50 = vmax.f32 %v696_v19, 0.0  ;;  %v773_v6 = vadd.f32 %v3364_v16, %v3679_v15 }
 0x1c1   :  { %v3765_v56 = vpack.c.b16 %v1311_v42, %v1310_v40  ;;  %v948_v54 = vpack.c.bf16 %v850_v14, %v850_v14  ;;  %v955_v19 = vpack.c.bf16 %v857_v7, %v857_v7  ;;  %v1255_v14 = vunpack.c.l.b16 %v949_v49 }
 0x1c2   :  { %4599 = vst [vmem:[#allocation5_spill] sm:$0xff] %v3748_v17  ;;  %2795 = vmatmul.msk.bf16.gmra.mxu3 %vm1053_vm2, %v3748_v17  ;;  %1245 = vrot.lane.b32.xlu0 %v3700_v61, %s3270_s30  ;;  %v838_v51 = vmax.f32 %v651_v0, 0.0  ;;  %v3133_v61 = vld [vmem:[%s4589_s0 + $0x140] sm:$0xff]  ;;  %v954_v25 = vpack.c.bf16 %v856_v50, %v856_v50  ;;  %v887_v15 = vmax.f32 %v773_v6, 0.0  ;;  %v752_v42 = vpop.f32.mrf.mxu2  ;;  %v984_v7 = vpack.c.bf16 %v886_v32, %v886_v32 }
 0x1c3   :  { %1158 = vrot.lane.b32.xlu1 %v3748_v17, %s3269_s18  ;;  %2713 = vmatmul.msk.bf16.gmra.mxu2 %vm394_vm1, %v3133_v61  ;;  %v1254_v36 = vunpack.c.l.b16 %v948_v54  ;;  %v751_v61 = vadd.f32 %v3364_v16, %v750_v26  ;;  %v753_v50 = vadd.f32 %v3364_v16, %v752_v42  ;;  %v703_v26 = vadd.f32 %v3364_v16, %v3588_v33 }
 0x1c4   :  { %v936_v0 = vpack.c.bf16 %v838_v51, %v838_v51  ;;  %v1211_v17 = vunpack.c.l.b16 %v954_v25  ;;  %v985_v11 = vpack.c.bf16 %v887_v15, %v887_v15  ;;  %v785_v15 = vpop.f32.mrf.mxu3 }
 0x1c5   :  { %v3785_v54 = vpack.c.b16 %v1255_v14, %v1254_v36  ;;  %v878_v25 = vmax.f32 %v751_v61, 0.0  ;;  %v879_v32 = vmax.f32 %v753_v50, 0.0  ;;  %v859_v36 = vmax.f32 %v703_v26, 0.0 }
 0x1c6   :  { %v1162_v6 = vunpack.c.l.b16 %v936_v0  ;;  %v1366_v0 = vunpack.c.l.b16 %v984_v7  ;;  %v711_v50 = vadd.f32 %v3364_v16, %v3628_v2  ;;  %v713_v7 = vadd.f32 %v3364_v16, %v3647_v62  ;;  %v3154_v2 = vld [vmem:[%s4590_s3 + $0x50] sm:$0xff] }
 0x1c7   :  { %v652_v10 = vpop.f32.mrf.mxu0  ;;  %v977_v14 = vpack.c.bf16 %v879_v32, %v879_v32 }
 0x1c8   :  { %v653_v41 = vadd.f32 %v3364_v16, %v652_v10  ;;  %v1212_v10 = vunpack.c.l.b16 %v955_v19  ;;  %v863_v62 = vmax.f32 %v713_v7, 0.0 }
 0x1ca   :  { %v839_v40 = vmax.f32 %v653_v41, 0.0  ;;  %1313 = vrot.lane.b32.xlu0 %v3765_v56, %s3270_s30  ;;  %v3156_v41 = vld [vmem:[%s4590_s3 + $0x60] sm:$0xff]  ;;  %v3791_v19 = vpack.c.b16 %v1212_v10, %v1211_v17  ;;  %v976_v17 = vpack.c.bf16 %v878_v25, %v878_v25 }
 0x1cb   :  { %1142 = vrot.lane.b32.xlu1 %v3477_v55, %s3269_s18  ;;  %v701_v55 = vadd.f32 %v3364_v16, %v3575_v18  ;;  %1712 = vmatpush.bf16.msrb.mxu2 %v3156_v41  ;;  %v3146_v18 = vld [vmem:[%s4590_s3 + $0x10] sm:$0xff] }
 0x1cc   :  { %v937_v28 = vpack.c.bf16 %v839_v40, %v839_v40  ;;  %v1367_v40 = vunpack.c.l.b16 %v985_v11  ;;  %1660 = vmatpush.bf16.msrb.mxu1 %v3146_v18  ;;  %v1402_v41 = vunpack.c.l.b16 %v976_v17  ;;  %v787_v32 = vpop.f32.mrf.mxu3 }
 0x1cd   :  { %v858_v33 = vmax.f32 %v701_v55, 0.0  ;;  %v1403_v55 = vunpack.c.l.b16 %v977_v14 }
 0x1ce   :  { %v1163_v51 = vunpack.c.l.b16 %v937_v28  ;;  %v1368_v10 = vpack.c.b16 %v1367_v40, %v1366_v0  ;;  %v862_v0 = vmax.f32 %v711_v50, 0.0 }
 0x1cf   :  { %v655_v12 = vpop.f32.mrf.mxu0 }
 0x1d0   :  { %v3787_v49 = vpack.c.b16 %v1163_v51, %v1162_v6  ;;  %v656_v42 = vadd.f32 %v3364_v16, %v655_v12  ;;  %v3155_v12 = vld [vmem:[%s4590_s3 + $0x58] sm:$0xff]  ;;  %v956_v6 = vpack.c.bf16 %v858_v33, %v858_v33  ;;  %v957_v51 = vpack.c.bf16 %v859_v36, %v859_v36  ;;  %v3153_v36 = vld [vmem:[%s4590_s3 + $0x48] sm:$0xff] }
 0x1d1   :  { %1713 = vmatpush.bf16.msrb.mxu2 %v3155_v12  ;;  %v3817_v33 = vpack.c.b16 %v1403_v55, %v1402_v41  ;;  %v788_v12 = vadd.f32 %v3364_v16, %v787_v32 }
 0x1d2   :  { %1292 = vrot.lane.b32.xlu0 %v3785_v54, %s3270_s30  ;;  %1165 = vrot.lane.b32.xlu2 %v3787_v49, %s3270_s30  ;;  %v840_v28 = vmax.f32 %v656_v42, 0.0  ;;  %v1218_v42 = vunpack.c.l.b16 %v956_v6  ;;  %v1219_v18 = vunpack.c.l.b16 %v957_v51  ;;  %v3152_v51 = vld [vmem:[%s4590_s3 + $0x40] sm:$0xff] }
 0x1d3   :  { %1214 = vrot.lane.b32.xlu1 %v3791_v19, %s3269_s18 }
 0x1d4   :  { %v938_v26 = vpack.c.bf16 %v840_v28, %v840_v28  ;;  %v3826_v7 = vpack.c.b16 %v1219_v18, %v1218_v42 }
 0x1d5   :  { %1714 = vmatpush.bf16.msrb.mxu2 %v3154_v2  ;;  %v3145_v2 = vld [vmem:[%s4590_s3 + $0x8] sm:$0xff] }
 0x1d6   :  { %v1169_v17 = vunpack.c.l.b16 %v938_v26  ;;  %1661 = vmatpush.bf16.msrb.mxu1 %v3145_v2 }
 0x1d7   :  { %v657_v61 = vpop.f32.mrf.mxu0 }
 0x1d8   :  { %v658_v11 = vadd.f32 %v3364_v16, %v657_v61  ;;  %v961_v61 = vpack.c.bf16 %v863_v62, %v863_v62 }
 0x1d9   :  { %1715 = vmatpush.bf16.msrb.mxu2 %v3153_v36 }
 0x1da   :  { %v841_v25 = vmax.f32 %v658_v11, 0.0  ;;  %1369 = vrot.lane.b32.xlu0 %v1368_v10, %s3270_s30  ;;  %1144 = vrot.lane.b32.xlu2 %v3642_v52, %s3270_s30  ;;  %v786_v52 = vadd.f32 %v3364_v16, %v785_v15  ;;  %v960_v10 = vpack.c.bf16 %v862_v0, %v862_v0  ;;  %v893_v15 = vmax.f32 %v788_v12, 0.0  ;;  %v3844_v0 = vld [vmem:[%s4588_s2] ss:$0 sm:$0xff] }
 0x1db   :  { %v1264_v55 = vunpack.c.l.b16 %v961_v61  ;;  %v726_v62 = vadd.f32 %v3844_v0, %v3582_v30  ;;  %v716_v36 = vadd.f32 %v3844_v0, %v3660_v24  ;;  %v3144_v61 = vld [vmem:[%s4590_s3] sm:$0xff] }
 0x1dc   :  { %v939_v40 = vpack.c.bf16 %v841_v25, %v841_v25  ;;  %v892_v6 = vmax.f32 %v786_v52, 0.0  ;;  %v1263_v41 = vunpack.c.l.b16 %v960_v10  ;;  %v991_v25 = vpack.c.bf16 %v893_v15, %v893_v15  ;;  %1662 = vmatpush.bf16.msrb.mxu1 %v3144_v61 }
 0x1dd   :  { %1716 = vmatpush.bf16.msrb.mxu2 %v3152_v51  ;;  %v868_v30 = vmax.f32 %v726_v62, 0.0  ;;  %v864_v24 = vmax.f32 %v716_v36, 0.0  ;;  %v691_v51 = vadd.f32 %v3844_v0, %v3550_v53 }
 0x1de   :  { %v1170_v14 = vunpack.c.l.b16 %v939_v40  ;;  %v728_v40 = vadd.f32 %v3844_v0, %v3594_v38  ;;  %v1265_v18 = vpack.c.b16 %v1264_v55, %v1263_v41 }
 0x1df   :  { %v660_v28 = vpop.f32.mrf.mxu0  ;;  %v966_v41 = vpack.c.bf16 %v868_v30, %v868_v30  ;;  %v854_v53 = vmax.f32 %v691_v51, 0.0 }
 0x1e0   :  { %v3824_v50 = vpack.c.b16 %v1170_v14, %v1169_v17  ;;  %v661_v11 = vadd.f32 %v3364_v16, %v660_v28  ;;  %v990_v16 = vpack.c.bf16 %v892_v6, %v892_v6  ;;  %v718_v17 = vadd.f32 %v3844_v0, %v3677_v13 }
 0x1e1   :  { %v1419_v28 = vunpack.c.l.b16 %v991_v25  ;;  %v869_v38 = vmax.f32 %v728_v40, 0.0 }
 0x1e2   :  { %2796 = vmatmul.msk.bf16.gmra.mxu3 %vm1053_vm2, %v3824_v50  ;;  %1405 = vrot.lane.b32.xlu0 %v3817_v33, %s3271_s22  ;;  %v842_v26 = vmax.f32 %v661_v11, 0.0  ;;  %v1418_v52 = vunpack.c.l.b16 %v990_v16  ;;  %v865_v11 = vmax.f32 %v718_v17, 0.0  ;;  %v962_v16 = vpack.c.bf16 %v864_v24, %v864_v24 }
 0x1e3   :  { %1221 = vrot.lane.b32.xlu2 %v3826_v7, %s3270_s30  ;;  %v967_v55 = vpack.c.bf16 %v869_v38, %v869_v38  ;;  %v766_v17 = vadd.f32 %v3844_v0, %v3633_v23 }
 0x1e4   :  { %v940_v14 = vpack.c.bf16 %v842_v26, %v842_v26  ;;  %v3861_v15 = vpack.c.b16 %v1419_v28, %v1418_v52  ;;  %v963_v25 = vpack.c.bf16 %v865_v11, %v865_v11  ;;  %v1270_v62 = vunpack.c.l.b16 %v962_v16  ;;  %v1033_v52 = vpop.permute.xlu0 %1032 }
 0x1e5   :  { %v884_v38 = vmax.f32 %v766_v17, 0.0 }
 0x1e6   :  { %v1192_v6 = vunpack.c.l.b16 %v940_v14  ;;  %v1271_v40 = vunpack.c.l.b16 %v963_v25 }
 0x1e7   :  { %v662_v32 = vpop.f32.mrf.mxu0  ;;  %v982_v61 = vpack.c.bf16 %v884_v38, %v884_v38 }
 0x1e8   :  { %v663_v42 = vadd.f32 %v3844_v0, %v662_v32  ;;  %v1317_v32 = vunpack.c.l.b16 %v966_v41 }
 0x1ea   :  { %v843_v12 = vmax.f32 %v663_v42, 0.0  ;;  %1391 = vrot.lane.b32.xlu0 %v1265_v18, %s3271_s22  ;;  %v952_v42 = vpack.c.bf16 %v854_v53, %v854_v53 }
 0x1eb   :  { %1257 = vrot.lane.b32.xlu2 %v3785_v54, %s3271_s22  ;;  %v693_v54 = vadd.f32 %v3844_v0, %v3560_v3  ;;  %v1318_v3 = vunpack.c.l.b16 %v967_v55 }
 0x1ec   :  { %v941_v10 = vpack.c.bf16 %v843_v12, %v843_v12  ;;  %v768_v12 = vadd.f32 %v3844_v0, %v3649_v63  ;;  %v1301_v28 = vunpack.c.l.b16 %v952_v42  ;;  %v733_v63 = vadd.f32 %v3844_v0, %v3621_v1  ;;  %v1014_v1 = vpop.permute.xlu2 %1013 }
 0x1ed   :  { %v855_v2 = vmax.f32 %v693_v54, 0.0  ;;  %v3876_v14 = vpack.c.b16 %v1318_v3, %v1317_v32  ;;  %v1359_v54 = vunpack.c.l.b16 %v982_v61 }
 0x1ee   :  { %v1193_v13 = vunpack.c.l.b16 %v941_v10  ;;  %v885_v23 = vmax.f32 %v768_v12, 0.0  ;;  %v731_v10 = vadd.f32 %v3844_v0, %v3601_v43  ;;  %v1066_v43 = vsel %vm1053_vm2, %v3524_v29, %v1033_v52 }
 0x1ef   :  { %v953_v36 = vpack.c.bf16 %v855_v2, %v855_v2  ;;  %v781_v29 = vadd.f32 %v3844_v0, %v3736_v47 }
 0x1f0   :  { %v1194_v26 = vpack.c.b16 %v1193_v13, %v1192_v6  ;;  %v983_v11 = vpack.c.bf16 %v885_v23, %v885_v23  ;;  %v741_v6 = vadd.f32 %v3844_v0, %v3672_v58  ;;  %v743_v13 = vadd.f32 %v3844_v0, %v3688_v44 }
 0x1f1   :  { %v1302_v30 = vunpack.c.l.b16 %v953_v36  ;;  %v870_v51 = vmax.f32 %v731_v10, 0.0  ;;  %v871_v58 = vmax.f32 %v733_v63, 0.0  ;;  %v790_v63 = vpop.f32.mrf.mxu3 }
 0x1f2   :  { %2797 = vmatmul.msk.bf16.gmra.mxu3 %vm1053_vm2, %v3723_v39  ;;  %1454 = vrot.lane.b32.xlu0 %v3861_v15, %s3269_s18  ;;  %v1360_v55 = vunpack.c.l.b16 %v983_v11  ;;  %v875_v16 = vmax.f32 %v743_v13, 0.0  ;;  %v761_v11 = vadd.f32 %v3844_v0, %v3603_v45 }
 0x1f3   :  { %1243 = vrot.lane.b32.xlu2 %v3713_v46, %s3271_s22  ;;  %1195 = vrot.lane.b32.xlu1 %v1194_v26, %s3270_s30  ;;  %v3880_v46 = vpack.c.b16 %v1271_v40, %v1270_v62  ;;  %v1303_v24 = vpack.c.b16 %v1302_v30, %v1301_v28  ;;  %v874_v26 = vmax.f32 %v741_v6, 0.0  ;;  %v968_v53 = vpack.c.bf16 %v870_v51, %v870_v51 }
 0x1f4   :  { %v969_v2 = vpack.c.bf16 %v871_v58, %v871_v58  ;;  %v973_v3 = vpack.c.bf16 %v875_v16, %v875_v16  ;;  %v1361_v62 = vpack.c.b16 %v1360_v55, %v1359_v54  ;;  %v890_v40 = vmax.f32 %v781_v29, 0.0  ;;  %v1021_v36 = vpop.permute.xlu2 %1020 }
 0x1f5   :  { %v972_v32 = vpack.c.bf16 %v874_v26, %v874_v26  ;;  %v1340_v17 = vunpack.c.l.b16 %v968_v53  ;;  %v778_v30 = vadd.f32 %v3844_v0, %v3720_v37  ;;  %v882_v51 = vmax.f32 %v761_v11, 0.0 }
 0x1f6   :  { %v1341_v52 = vunpack.c.l.b16 %v969_v2  ;;  %v1353_v47 = vunpack.c.l.b16 %v973_v3  ;;  %v988_v23 = vpack.c.bf16 %v890_v40, %v890_v40 }
 0x1f7   :  { %v1352_v12 = vunpack.c.l.b16 %v972_v32  ;;  %v980_v26 = vpack.c.bf16 %v882_v51, %v882_v51 }
 0x1f8   :  { %v1342_v6 = vpack.c.b16 %v1341_v52, %v1340_v17 }
 0x1f9   :  { %v1354_v37 = vpack.c.b16 %v1353_v47, %v1352_v12 }
 0x1fa   :  { %1438 = vrot.lane.b32.xlu0 %v3876_v14, %s3269_s18 }
 0x1fb   :  { %1306 = vrot.lane.b32.xlu2 %v3880_v46, %s3269_s18  ;;  %1266 = vrot.lane.b32.xlu1 %v1265_v18, %s3270_s30  ;;  %v1040_v18 = vpop.permute.xlu0 %1039 }
 0x1fc   :  { %v1068_v44 = vsel %vm1057_vm3, %v1066_v43, %v1040_v18  ;;  %v889_v18 = vmax.f32 %v778_v30, 0.0 }
 0x202   :  { %2798 = vmatmul.msk.bf16.gmra.mxu3 %vm1053_vm2, %v3880_v46 }
 0x203   :  { %1290 = vrot.lane.b32.xlu2 %v3824_v50, %s3269_s18  ;;  %1304 = vrot.lane.b32.xlu1 %v1303_v24, %s3271_s22  ;;  %v783_v50 = vadd.f32 %v3844_v0, %v3770_v5  ;;  %v776_v5 = vadd.f32 %v3844_v0, %v3702_v8  ;;  %v1099_v61 = vpop.permute.xlu0 %1098  ;;  %v763_v8 = vadd.f32 %v3844_v0, %v3615_v59 }
 0x204   :  { %v1047_v41 = vpop.permute.xlu1 %1046  ;;  %v1124_v59 = vsel %vm1053_vm2, %v3562_v4, %v1099_v61  ;;  %v1449_v4 = vunpack.c.l.b16 %v980_v26 }
 0x205   :  { %v1070_v25 = vsel %vm1060_vm4, %v1068_v44, %v1047_v41  ;;  %v891_v42 = vmax.f32 %v783_v50, 0.0  ;;  %v888_v13 = vmax.f32 %v776_v5, 0.0  ;;  %v883_v45 = vmax.f32 %v763_v8, 0.0 }
 0x206   :  { %1717 = vmatmul.bf16.vlgmr.msrb.gmra.mxu2 %v1070_v25  ;;  %v987_v44 = vpack.c.bf16 %v889_v18, %v889_v18  ;;  %v792_v25 = vpop.f32.mrf.mxu3 }
 0x207   :  { %v989_v10 = vpack.c.bf16 %v891_v42, %v891_v42  ;;  %v986_v54 = vpack.c.bf16 %v888_v13, %v888_v13  ;;  %v981_v16 = vpack.c.bf16 %v883_v45, %v883_v45  ;;  %v793_v17 = vadd.f32 %v3844_v0, %v792_v25 }
 0x208   :  { %v1374_v50 = vunpack.c.l.b16 %v987_v44 }
 0x209   :  { %v1412_v43 = vunpack.c.l.b16 %v989_v10  ;;  %v1373_v29 = vunpack.c.l.b16 %v986_v54  ;;  %v1450_v2 = vunpack.c.l.b16 %v981_v16  ;;  %v895_v47 = vmax.f32 %v793_v17, 0.0 }
 0x20b   :  { %1362 = vrot.lane.b32.xlu2 %v1361_v62, %s3269_s18  ;;  %1288 = vrot.lane.b32.xlu1 %v3787_v49, %s3271_s22  ;;  %v1078_v53 = vpop.permute.xlu0 %1077  ;;  %v1375_v62 = vpack.c.b16 %v1374_v50, %v1373_v29  ;;  %v1451_v12 = vpack.c.b16 %v1450_v2, %v1449_v4  ;;  %v993_v30 = vpack.c.bf16 %v895_v47, %v895_v47 }
 0x20c   :  { %v1007_v28 = vpop.permute.xlu1 %1006  ;;  %v1116_v32 = vsel %vm1053_vm2, %v3403_v57, %v1078_v53  ;;  %v665_v57 = vpop.f32.mrf.mxu0 }
 0x20d   :  { %v1056_v38 = vsel %vm1053_vm2, %v3379_v31, %v1007_v28  ;;  %v1411_v31 = vunpack.c.l.b16 %v988_v23  ;;  %v1459_v23 = vunpack.c.l.b16 %v993_v30  ;;  %v666_v8 = vadd.f32 %v3844_v0, %v665_v57 }
 0x20e   :  { %v1059_v49 = vsel %vm1057_vm3, %v1056_v38, %v1014_v1  ;;  %v1108_v1 = vpop.permute.xlu2 %1107  ;;  %v795_v28 = vpop.f32.mrf.mxu3 }
 0x20f   :  { %v1062_v24 = vsel %vm1060_vm4, %v1059_v49, %v1021_v36  ;;  %v1413_v55 = vpack.c.b16 %v1412_v43, %v1411_v31  ;;  %v791_v36 = vadd.f32 %v3844_v0, %v790_v63  ;;  %v796_v61 = vadd.f32 %v3844_v0, %v795_v28 }
 0x210   :  { %1663 = vmatmul.bf16.vlgmr.msrb.gmra.mxu1 %v1062_v24 }
 0x211   :  { %v896_v13 = vmax.f32 %v796_v61, 0.0 }
 0x212   :  { %2799 = vmatmul.msk.bf16.gmra.mxu3 %vm1053_vm2, %v3876_v14 }
 0x213   :  { %1343 = vrot.lane.b32.xlu2 %v1342_v6, %s3270_s30  ;;  %1355 = vrot.lane.b32.xlu1 %v1354_v37, %s3271_s22  ;;  %v1157_v63 = vpop.permute.xlu0 %1156  ;;  %v994_v51 = vpack.c.bf16 %v896_v13, %v896_v13 }
 0x214   :  { %v667_v49 = vpop.f32.mrf.mxu0 }
 0x215   :  { %v3929_v58 = vpop.permute.xlu1 %1100  ;;  %v668_v6 = vadd.f32 %v3844_v0, %v667_v49 }
 0x216   :  { %v1126_v41 = vsel %vm1057_vm3, %v1124_v59, %v3929_v58  ;;  %v1087_v40 = vpop.permute.xlu2 %1086  ;;  %v797_v10 = vpop.f32.mrf.mxu3 }
 0x217   :  { %v1128_v14 = vsel %vm1060_vm4, %v1126_v41, %v1108_v1  ;;  %v798_v24 = vadd.f32 %v3844_v0, %v797_v10  ;;  %v845_v43 = vmax.f32 %v668_v6, 0.0  ;;  %v688_v10 = vadd.f32 %v3844_v0, %v3542_v48 }
 0x218   :  { %1722 = vmatmul.bf16.gmra.mxu2 %v1128_v14  ;;  %v1465_v14 = vunpack.c.l.b16 %v994_v51 }
 0x219   :  { %v897_v18 = vmax.f32 %v798_v24, 0.0  ;;  %v853_v24 = vmax.f32 %v688_v10, 0.0 }
 0x21b   :  { %1414 = vrot.lane.b32.xlu2 %v1413_v55, %s3270_s30  ;;  %1336 = vrot.lane.b32.xlu1 %v3826_v7, %s3271_s22  ;;  %v894_v7 = vmax.f32 %v791_v36, 0.0  ;;  %v995_v45 = vpack.c.bf16 %v897_v18, %v897_v18  ;;  %v1136_v44 = vpop.permute.xlu0 %1135  ;;  %v678_v36 = vadd.f32 %v3844_v0, %v3499_v9  ;;  %v686_v9 = vadd.f32 %v3844_v0, %v3528_v34 }
 0x21c   :  { %v1174_v25 = vsel %vm1053_vm2, %v3433_v21, %v1136_v44  ;;  %v676_v21 = vadd.f32 %v3844_v0, %v3481_v60  ;;  %v951_v18 = vpack.c.bf16 %v853_v24, %v853_v24 }
 0x21d   :  { %v1085_v3 = vpop.permute.xlu1 %1084  ;;  %v992_v5 = vpack.c.bf16 %v894_v7, %v894_v7  ;;  %v1466_v55 = vunpack.c.l.b16 %v995_v45 }
 0x21e   :  { %v1118_v42 = vsel %vm1057_vm3, %v1116_v32, %v1085_v3 }
 0x21f   :  { %v1120_v52 = vsel %vm1060_vm4, %v1118_v42, %v1087_v40  ;;  %v1458_v38 = vunpack.c.l.b16 %v992_v5  ;;  %v1467_v50 = vpack.c.b16 %v1466_v55, %v1465_v14 }
 0x220   :  { %1668 = vmatmul.bf16.gmra.mxu1 %v1120_v52  ;;  %v848_v52 = vmax.f32 %v676_v21, 0.0 }
 0x221   :  { %v1460_v11 = vpack.c.b16 %v1459_v23, %v1458_v38 }
 0x222   :  { %2800 = vmatmul.msk.bf16.gmra.mxu3 %vm1053_vm2, %v1375_v62  ;;  %v946_v47 = vpack.c.bf16 %v848_v52, %v848_v52  ;;  %v4603_v52 = vld [vmem:[#allocation4_spill] sm:$0xff] }
 0x223   :  { %1452 = vrot.lane.b32.xlu2 %v1451_v12, %s3271_s22  ;;  %1407 = vrot.lane.b32.xlu1 %v1375_v62, %s3269_s18  ;;  %v1208_v32 = vpop.permute.xlu0 %1207  ;;  %v849_v12 = vmax.f32 %v678_v36, 0.0  ;;  %v4602_v36 = vld [vmem:[#allocation3_spill] sm:$0xff] }
 0x224   :  { %v1249_v30 = vunpack.c.l.b16 %v946_v47 }
 0x225   :  { %v947_v28 = vpack.c.bf16 %v849_v12, %v849_v12  ;;  %v748_v12 = vadd.f32 %v3844_v0, %v4603_v52 }
 0x227   :  { %v1250_v38 = vunpack.c.l.b16 %v947_v28 }
 0x229   :  { %v1251_v49 = vpack.c.b16 %v1250_v38, %v1249_v30 }
 0x22b   :  { %1436 = vrot.lane.b32.xlu2 %v3765_v56, %s3271_s22  ;;  %1393 = vrot.lane.b32.xlu1 %v1354_v37, %s3270_s30  ;;  %v844_v56 = vmax.f32 %v666_v8, 0.0  ;;  %v1182_v37 = vsel %vm1053_vm2, %v3580_v27, %v1157_v63  ;;  %v1189_v17 = vpop.permute.xlu0 %1188 }
 0x22c   :  { %v1166_v31 = vpop.permute.xlu2 %1165  ;;  %v1230_v57 = vsel %vm1053_vm2, %v3626_v20, %v1189_v17  ;;  %v852_v20 = vmax.f32 %v686_v9, 0.0  ;;  %v746_v17 = vadd.f32 %v3844_v0, %v4602_v36  ;;  %v4022_v9 = vpop.f32.mrf.mxu3 }
 0x22d   :  { %v942_v41 = vpack.c.bf16 %v844_v56, %v844_v56  ;;  %v1231_v60 = vsel %vm1057_vm3, %v1230_v57, %v3929_v58  ;;  %v1297_v56 = vunpack.c.l.b16 %v951_v18  ;;  %v4019_v57 = vld [vmem:[%s4591_s4] ss:$0 sm:$0xff] }
 0x22e   :  { %v950_v13 = vpack.c.bf16 %v852_v20, %v852_v20  ;;  %v876_v38 = vmax.f32 %v746_v17, 0.0 }
 0x22f   :  { %v1199_v26 = vunpack.c.l.b16 %v942_v41 }
 0x232   :  { %2801 = vmatmul.msk.bf16.gmra.mxu3 %vm1053_vm2, %v3861_v15  ;;  %v943_v15 = vpack.c.bf16 %v845_v43, %v845_v43 }
 0x233   :  { %1461 = vrot.lane.b32.xlu1 %v1460_v11, %s3270_s30  ;;  %v3979_v5 = vpop.permute.xlu0 %1259 }
 0x234   :  { %v1145_v27 = vpop.permute.xlu2 %1144  ;;  %v1200_v16 = vunpack.c.l.b16 %v943_v15 }
 0x235   :  { %v3958_v1 = vpop.permute.xlu1 %1158 }
 0x236   :  { %v1184_v59 = vsel %vm1057_vm3, %v1182_v37, %v3958_v1  ;;  %v1201_v2 = vpack.c.b16 %v1200_v16, %v1199_v26 }
 0x237   :  { %v1186_v54 = vsel %vm1060_vm4, %v1184_v59, %v1166_v31  ;;  %v1296_v31 = vunpack.c.l.b16 %v950_v13  ;;  %v736_v59 = vadd.f32 %v3844_v0, %v3638_v35 }
 0x238   :  { %1727 = vmatmul.bf16.gmra.mxu2 %v1186_v54  ;;  %v1237_v3 = vsel %vm1053_vm2, %v1201_v2, %v1208_v32  ;;  %v4600_v54 = vld [vmem:[#allocation2_spill] sm:$0xff] }
 0x239   :  { %v1298_v45 = vpack.c.b16 %v1297_v56, %v1296_v31  ;;  %v738_v44 = vadd.f32 %v3844_v0, %v4600_v54  ;;  %v872_v55 = vmax.f32 %v736_v59, 0.0 }
 0x23b   :  { %1440 = vrot.lane.b32.xlu1 %v3817_v33, %s3270_s30  ;;  %v1246_v8 = vpop.permute.xlu0 %1245 }
 0x23d   :  { %v1143_v29 = vpop.permute.xlu1 %1142  ;;  %v1222_v62 = vpop.permute.xlu2 %1221 }
 0x23e   :  { %v1176_v53 = vsel %vm1057_vm3, %v1174_v25, %v1143_v29  ;;  %v970_v25 = vpack.c.bf16 %v872_v55, %v872_v55 }
 0x23f   :  { %v1178_v4 = vsel %vm1060_vm4, %v1176_v53, %v1145_v27  ;;  %v873_v27 = vmax.f32 %v738_v44, 0.0 }
 0x240   :  { %1673 = vmatmul.bf16.gmra.mxu1 %v1178_v4  ;;  %v1347_v2 = vunpack.c.l.b16 %v970_v25 }
 0x241   :  { %v971_v29 = vpack.c.bf16 %v873_v27, %v873_v27 }
 0x242   :  { %2802 = vmatmul.msk.bf16.gmra.mxu3 %vm1053_vm2, %v1467_v50  ;;  %v4601_v50 = vld [vmem:[#allocation5_spill] sm:$0xff] }
 0x243   :  { %v1314_v15 = vpop.permute.xlu0 %1313  ;;  %v1348_v32 = vunpack.c.l.b16 %v971_v29 }
 0x245   :  { %v1215_v33 = vpop.permute.xlu1 %1214  ;;  %v1258_v7 = vpop.permute.xlu2 %1257 }
 0x246   :  { %v1239_v40 = vsel %vm1057_vm3, %v1237_v3, %v1215_v33  ;;  %v1282_v11 = vsel %vm1053_vm2, %v1251_v49, %v1258_v7 }
 0x247   :  { %v1241_v42 = vsel %vm1060_vm4, %v1239_v40, %v1222_v62  ;;  %v1284_v58 = vsel %vm1057_vm3, %v1282_v11, %v3979_v5  ;;  %v1349_v40 = vpack.c.b16 %v1348_v32, %v1347_v2 }
 0x248   :  { %1732 = vmatmul.bf16.gmra.mxu2 %v1241_v42 }
 0x24b   :  { %v1293_v4 = vpop.permute.xlu0 %1292 }
 0x24d   :  { %v1244_v61 = vpop.permute.xlu2 %1243 }
 0x24e   :  { %v1275_v48 = vsel %vm1053_vm2, %v3681_v22, %v1244_v61  ;;  %v755_v22 = vpop.f32.mrf.mxu2  ;;  %v974_v61 = vpack.c.bf16 %v876_v38, %v876_v38 }
 0x24f   :  { %v1276_v43 = vsel %vm1057_vm3, %v1275_v48, %v3958_v1  ;;  %v756_v31 = vadd.f32 %v3844_v0, %v755_v22 }
 0x250   :  { %v1278_v41 = vsel %vm1060_vm4, %v1276_v43, %v1246_v8 }
 0x251   :  { %v880_v59 = vmax.f32 %v756_v31, 0.0  ;;  %v2925_v31 = vld [vmem:[%s4592_s5 + $0xf0] sm:$0xf] }
 0x253   :  { %v1370_v28 = vpop.permute.xlu0 %1369 }
 0x255   :  { %v3994_v37 = vpop.permute.xlu2 %1306 }
 0x256   :  { %v757_v3 = vpop.f32.mrf.mxu2 }
 0x257   :  { %v758_v56 = vadd.f32 %v3844_v0, %v757_v3 }
 0x259   :  { %v881_v54 = vmax.f32 %v758_v56, 0.0  ;;  %v3193_v56 = vld [vmem:[%s4592_s5 + $0xf4] sm:$0xf0] }
 0x25d   :  { %v1291_v26 = vpop.permute.xlu2 %1290 }
 0x265   :  { %v1196_v23 = vpop.permute.xlu1 %1195  ;;  %v1363_v21 = vpop.permute.xlu2 %1362 }
 0x266   :  { %v1233_v63 = vsel %vm1060_vm4, %v1231_v60, %v1196_v23  ;;  %v877_v23 = vmax.f32 %v748_v12, 0.0 }
 0x267   :  { %1678 = vmatmul.bf16.gmra.mxu1 %v1233_v63 }
 0x268   :  { %v975_v20 = vpack.c.bf16 %v877_v23, %v877_v23 }
 0x26a   :  { %v1398_v13 = vunpack.c.l.b16 %v975_v20 }
 0x26d   :  { %v1267_v6 = vpop.permute.xlu1 %1266  ;;  %v1344_v11 = vpop.permute.xlu2 %1343 }
 0x26e   :  { %v1286_v34 = vsel %vm1060_vm4, %v1284_v58, %v1267_v6  ;;  %v1397_v58 = vunpack.c.l.b16 %v974_v61 }
 0x26f   :  { %1737 = vmatmul.bf16.gmra.mxu2 %v1286_v34  ;;  %v1406_v34 = vpop.permute.xlu0 %1405 }
 0x275   :  { %v1305_v51 = vpop.permute.xlu1 %1304  ;;  %v1415_v44 = vpop.permute.xlu2 %1414 }
 0x276   :  { %v1330_v14 = vsel %vm1053_vm2, %v1298_v45, %v1305_v51  ;;  %v1399_v51 = vpack.c.b16 %v1398_v13, %v1397_v58  ;;  %v4039_v45 = vpop.f32.mrf.mxu3 }
 0x277   :  { %1683 = vmatmul.bf16.gmra.mxu1 %v1278_v41  ;;  %v1332_v1 = vsel %vm1057_vm3, %v1330_v14, %v3994_v37  ;;  %v979_v14 = vpack.c.bf16 %v881_v54, %v881_v54  ;;  %v1392_v27 = vpop.permute.xlu0 %1391 }
 0x278   :  { %v1334_v35 = vsel %vm1060_vm4, %v1332_v1, %v1314_v15  ;;  %v978_v15 = vpack.c.bf16 %v880_v59, %v880_v59  ;;  %v1423_v25 = vsel %vm1053_vm2, %v3723_v39, %v1392_v27  ;;  %v3191_v27 = vld [vmem:[%s4592_s5 + $0xe4] sm:$0xf0] }
 0x27a   :  { %v1444_v29 = vunpack.c.l.b16 %v978_v15 }
 0x27d   :  { %v1289_v16 = vpop.permute.xlu1 %1288 }
 0x27e   :  { %v1322_v53 = vsel %vm1053_vm2, %v4601_v50, %v1289_v16  ;;  %v1453_v50 = vpop.permute.xlu2 %1452 }
 0x27f   :  { %1742 = vmatmul.bf16.gmra.mxu2 %v1334_v35  ;;  %v1324_v33 = vsel %vm1057_vm3, %v1322_v53, %v1291_v26  ;;  %v1777_v26 = vpop.f32.mrf.mxu3  ;;  %v1445_v35 = vunpack.c.l.b16 %v979_v14  ;;  %v1455_v39 = vpop.permute.xlu0 %1454 }
 0x280   :  { %v1326_v42 = vsel %vm1060_vm4, %v1324_v33, %v1293_v4  ;;  %v1424_v4 = vsel %vm1057_vm3, %v1423_v25, %v3994_v37  ;;  %v3175_v25 = vld [vmem:[%s4592_s5 + $0x64] sm:$0xf0] }
 0x281   :  { %v1446_v2 = vpack.c.b16 %v1445_v35, %v1444_v29 }
 0x283   :  { %v1478_v17 = vsel %vm1053_vm2, %v1446_v2, %v1453_v50  ;;  %v3173_v2 = vld [vmem:[%s4592_s5 + $0x54] sm:$0xf0] }
 0x284   :  { %v1480_v37 = vsel %vm1057_vm3, %v1478_v17, %v1455_v39 }
 0x285   :  { %v1356_v62 = vpop.permute.xlu1 %1355 }
 0x286   :  { %v1385_v7 = vsel %vm1053_vm2, %v1349_v40, %v1356_v62 }
 0x287   :  { %1688 = vmatmul.bf16.gmra.mxu1 %v1326_v42  ;;  %v1387_v30 = vsel %vm1057_vm3, %v1385_v7, %v1363_v21  ;;  %v1779_v36 = vpop.f32.mrf.mxu3 }
 0x288   :  { %v1389_v63 = vsel %vm1060_vm4, %v1387_v30, %v1370_v28  ;;  %v1437_v28 = vpop.permute.xlu2 %1436 }
 0x289   :  { %v1718_v47 = vpop.f32.mrf.mxu2  ;;  %v1470_v38 = vsel %vm1053_vm2, %v3880_v46, %v1437_v28 }
 0x28d   :  { %v1337_v60 = vpop.permute.xlu1 %1336  ;;  %v1664_v10 = vpop.f32.mrf.mxu1 }
 0x28e   :  { %v1665_v49 = vadd.f32 %v4019_v57, %v1664_v10  ;;  %v1378_v24 = vsel %vm1053_vm2, %v3791_v19, %v1337_v60  ;;  %v1439_v60 = vpop.permute.xlu0 %1438 }
 0x28f   :  { %1747 = vmatmul.bf16.gmra.mxu2 %v1389_v63  ;;  %v1379_v6 = vsel %vm1057_vm3, %v1378_v24, %v3979_v5  ;;  %v1430_v5 = vsel %vm1053_vm2, %v1399_v51, %v1406_v34  ;;  %v1472_v10 = vsel %vm1057_vm3, %v1470_v38, %v1439_v60  ;;  %v2926_v51 = vor.u32 %v3193_v56, %v2925_v31  ;;  %v2909_v38 = vld [vmem:[%s4592_s5 + $0xd0] sm:$0xf] }
 0x290   :  { %v4028_v8 = vadd.f32 %v1718_v47, %v1665_v49  ;;  %v1381_v19 = vsel %vm1060_vm4, %v1379_v6, %v1344_v11  ;;  %v4062_v11 = vpop.f32.mrf.mxu3  ;;  %v2813_v56 = vld [vmem:[%s4592_s5 + $0x10] sm:$0xf] }
 0x291   :  { %v4032_v18 = vpop.f32.mrf.mxu2  ;;  %2335 = vmatpush.bf16.msra.mxu2 %v2926_v51 }
 0x295   :  { %v1408_v48 = vpop.permute.xlu1 %1407  ;;  %v4036_v43 = vpop.f32.mrf.mxu1 }
 0x296   :  { %v1432_v41 = vsel %vm1057_vm3, %v1430_v5, %v1408_v48  ;;  %v3177_v5 = vld [vmem:[%s4592_s5 + $0x74] sm:$0xf0] }
 0x297   :  { %1693 = vmatmul.bf16.gmra.mxu1 %v1381_v19  ;;  %v1434_v0 = vsel %vm1060_vm4, %v1432_v41, %v1415_v44  ;;  %v2861_v19 = vld [vmem:[%s4592_s5 + $0x70] sm:$0xf] }
 0x298   :  { %v4067_v34 = vpop.f32.mrf.mxu3  ;;  %v2862_v59 = vor.u32 %v3177_v5, %v2861_v19  ;;  %v3165_v19 = vld [vmem:[%s4592_s5 + $0x14] sm:$0xf0] }
 0x299   :  { %v2814_v51 = vor.u32 %v3165_v19, %v2813_v56 }
 0x29a   :  { %2321 = vmatpush.bf16.msra.mxu3 %v2862_v59  ;;  %v2805_v59 = vld [vmem:[%s4592_s5] sm:$0xf] }
 0x29b   :  { %v1723_v22 = vpop.f32.mrf.mxu2 }
 0x29d   :  { %v1669_v55 = vpop.f32.mrf.mxu1  ;;  %v1394_v1 = vpop.permute.xlu1 %1393 }
 0x29e   :  { %v1670_v16 = vadd.f32 %v4019_v57, %v1669_v55  ;;  %v1426_v3 = vsel %vm1060_vm4, %v1424_v4, %v1394_v1  ;;  %v2845_v4 = vld [vmem:[%s4592_s5 + $0x50] sm:$0xf] }
 0x29f   :  { %1752 = vmatmul.bf16.gmra.mxu2 %v1434_v0  ;;  %v2917_v0 = vld [vmem:[%s4592_s5 + $0xe0] sm:$0xf] }
 0x2a0   :  { %v1724_v53 = vadd.f32 %v1723_v22, %v1670_v16  ;;  %v1787_v48 = vpop.f32.mrf.mxu3  ;;  %v2853_v16 = vld [vmem:[%s4592_s5 + $0x60] sm:$0xf] }
 0x2a1   :  { %v2854_v35 = vor.u32 %v3175_v25, %v2853_v16 }
 0x2a2   :  { %v1778_v40 = vadd.f32 %v1777_v26, %v1724_v53  ;;  %v2918_v26 = vor.u32 %v3191_v27, %v2917_v0  ;;  %v2901_v27 = vld [vmem:[%s4592_s5 + $0xc0] sm:$0xf] }
 0x2a3   :  { %v1725_v62 = vpop.f32.mrf.mxu2  ;;  %2322 = vmatpush.bf16.msra.mxu3 %v2854_v35 }
 0x2a4   :  { %v1819_v12 = vmax.f32 %v1778_v40, 0.0  ;;  %2336 = vmatpush.bf16.msra.mxu2 %v2918_v26 }
 0x2a5   :  { %v1671_v32 = vpop.f32.mrf.mxu1  ;;  %v1462_v42 = vpop.permute.xlu1 %1461 }
 0x2a6   :  { %v1672_v33 = vadd.f32 %v4019_v57, %v1671_v32  ;;  %v1482_v47 = vsel %vm1060_vm4, %v1480_v37, %v1462_v42  ;;  %v2846_v32 = vor.u32 %v3173_v2, %v2845_v4  ;;  %v2837_v42 = vld [vmem:[%s4592_s5 + $0x40] sm:$0xf]  ;;  %v2829_v37 = vld [vmem:[%s4592_s5 + $0x30] sm:$0xf] }
 0x2a7   :  { %1698 = vmatmul.bf16.gmra.mxu1 %v1426_v3 }
 0x2a8   :  { %v1726_v21 = vadd.f32 %v1725_v62, %v1672_v33  ;;  %v1789_v54 = vpop.f32.mrf.mxu3  ;;  %2323 = vmatpush.bf16.msra.mxu3 %v2846_v32 }
 0x2aa   :  { %v1780_v52 = vadd.f32 %v1779_v36, %v1726_v21  ;;  %v3171_v21 = vld [vmem:[%s4592_s5 + $0x44] sm:$0xf0] }
 0x2ab   :  { %v2838_v17 = vor.u32 %v3171_v21, %v2837_v42  ;;  %v1667_v42 = vadd.f32 %v4019_v57, %v4036_v43  ;;  %v3077_v21 = vld [vmem:[%s4592_s5 + $0x220] sm:$0xf]  ;;  %v3069_v43 = vld [vmem:[%s4592_s5 + $0x210] sm:$0xf] }
 0x2ac   :  { %v1820_v7 = vmax.f32 %v1780_v52, 0.0 }
 0x2ad   :  { %v1441_v23 = vpop.permute.xlu1 %1440  ;;  %2324 = vmatpush.bf16.msra.mxu3 %v2838_v17 }
 0x2ae   :  { %v3251_v30 = vpack.i.bf16 %v1820_v7, %v1819_v12  ;;  %v1474_v63 = vsel %vm1060_vm4, %v1472_v10, %v1441_v23  ;;  %v3189_v23 = vld [vmem:[%s4592_s5 + $0xd4] sm:$0xf0] }
 0x2af   :  { %1757 = vmatmul.bf16.gmra.mxu2 %v1482_v47  ;;  %v3169_v47 = vld [vmem:[%s4592_s5 + $0x34] sm:$0xf0]  ;;  %v2910_v10 = vor.u32 %v3189_v23, %v2909_v38 }
 0x2b0   :  { %3252 = vrot.lane.b32.xlu0 %v3251_v30, %s3269_s18  ;;  %v4082_v14 = vpop.f32.mrf.mxu3  ;;  %v2830_v28 = vor.u32 %v3169_v47, %v2829_v37 }
 0x2b1   :  { %2337 = vmatpush.bf16.msra.mxu2 %v2910_v10  ;;  %v3061_v10 = vld [vmem:[%s4592_s5 + $0x200] sm:$0xf] }
 0x2b2   :  { %2325 = vmatpush.bf16.msra.mxu3 %v2830_v28 }
 0x2b7   :  { %1703 = vmatmul.bf16.gmra.mxu1 %v1474_v63  ;;  %v3085_v63 = vld [vmem:[%s4592_s5 + $0x230] sm:$0xf] }
 0x2b8   :  { %v4109_v36 = vpop.f32.mrf.mxu3 }
 0x2bb   :  { %v1728_v49 = vpop.f32.mrf.mxu2 }
 0x2bd   :  { %v1674_v61 = vpop.f32.mrf.mxu1 }
 0x2be   :  { %v1675_v20 = vadd.f32 %v4019_v57, %v1674_v61  ;;  %v2821_v61 = vld [vmem:[%s4592_s5 + $0x20] sm:$0xf] }
 0x2c0   :  { %v4060_v24 = vadd.f32 %v1728_v49, %v1675_v20  ;;  %v3233_v49 = vld [vmem:[%s4592_s5 + $0x234] sm:$0xf0] }
 0x2c3   :  { %v1730_v13 = vpop.f32.mrf.mxu2 }
 0x2c5   :  { %v1676_v6 = vpop.f32.mrf.mxu1 }
 0x2c6   :  { %v1677_v58 = vadd.f32 %v4019_v57, %v1676_v6  ;;  %v3086_v6 = vor.u32 %v3233_v49, %v3085_v63  ;;  %v3227_v63 = vld [vmem:[%s4592_s5 + $0x204] sm:$0xf0] }
 0x2c8   :  { %v4065_v46 = vadd.f32 %v1730_v13, %v1677_v58  ;;  %v3167_v58 = vld [vmem:[%s4592_s5 + $0x24] sm:$0xf0]  ;;  %v1797_v13 = vpop.f32.mrf.mxu3  ;;  %2381 = vmatpush.bf16.msra.mxu1 %v3086_v6 }
 0x2cb   :  { %v1733_v44 = vpop.f32.mrf.mxu2 }
 0x2d3   :  { %v1735_v22 = vpop.f32.mrf.mxu2 }
 0x2e4   :  { %v1679_v41 = vpop.f32.mrf.mxu1 }
 0x2e5   :  { %v1680_v15 = vadd.f32 %v4019_v57, %v1679_v41 }
 0x2e7   :  { %v1734_v55 = vadd.f32 %v1733_v44, %v1680_v15 }
 0x2e9   :  { %v1788_v50 = vadd.f32 %v1787_v48, %v1734_v55  ;;  %v2822_v48 = vor.u32 %v3167_v58, %v2821_v61  ;;  %v3062_v61 = vor.u32 %v3227_v63, %v3061_v10  ;;  %v3053_v10 = vld [vmem:[%s4592_s5 + $0x1f0] sm:$0xf]  ;;  %v3225_v63 = vld [vmem:[%s4592_s5 + $0x1f4] sm:$0xf0] }
 0x2eb   :  { %v1823_v62 = vmax.f32 %v1788_v50, 0.0  ;;  %2326 = vmatpush.bf16.msra.mxu3 %v2822_v48 }
 0x2ec   :  { %v1681_v1 = vpop.f32.mrf.mxu1 }
 0x2ed   :  { %v1682_v29 = vadd.f32 %v4019_v57, %v1681_v1  ;;  %v3187_v1 = vld [vmem:[%s4592_s5 + $0xc4] sm:$0xf0] }
 0x2ee   :  { %v2902_v16 = vor.u32 %v3187_v1, %v2901_v27 }
 0x2ef   :  { %v1736_v53 = vadd.f32 %v1735_v22, %v1682_v29  ;;  %2327 = vmatpush.bf16.msra.mxu3 %v2814_v51  ;;  %v1799_v22 = vpop.f32.mrf.mxu3 }
 0x2f0   :  { %2338 = vmatpush.bf16.msra.mxu2 %v2902_v16 }
 0x2f1   :  { %v1790_v3 = vadd.f32 %v1789_v54, %v1736_v53  ;;  %v3163_v54 = vld [vmem:[%s4592_s5 + $0x4] sm:$0xf0] }
 0x2f2   :  { %v1738_v33 = vpop.f32.mrf.mxu2  ;;  %v2806_v41 = vor.u32 %v3163_v54, %v2805_v59 }
 0x2f3   :  { %v1824_v40 = vmax.f32 %v1790_v3, 0.0 }
 0x2f4   :  { %v1684_v39 = vpop.f32.mrf.mxu1  ;;  %2328 = vmatpush.bf16.msra.mxu3 %v2806_v41  ;;  %v3183_v41 = vld [vmem:[%s4592_s5 + $0xa4] sm:$0xf0] }
 0x2f5   :  { %v1685_v52 = vadd.f32 %v4019_v57, %v1684_v39  ;;  %v3246_v12 = vpack.i.bf16 %v1824_v40, %v1823_v62  ;;  %v3231_v39 = vld [vmem:[%s4592_s5 + $0x224] sm:$0xf0] }
 0x2f7   :  { %v4112_v7 = vadd.f32 %v1738_v33, %v1685_v52  ;;  %3247 = vrot.lane.b32.xlu2 %v3246_v12, %s3269_s18  ;;  %v4162_v53 = vpop.f32.mrf.mxu3  ;;  %v3078_v52 = vor.u32 %v3231_v39, %v3077_v21  ;;  %v1721_v12 = vadd.f32 %v4032_v18, %v1667_v42  ;;  %v1773_v18 = vadd.f32 %v4022_v9, %v4028_v8  ;;  %v2893_v8 = vld [vmem:[%s4592_s5 + $0xb0] sm:$0xf]  ;;  %v3209_v42 = vld [vmem:[%s4592_s5 + $0x174] sm:$0xf0] }
 0x2f9   :  { %2382 = vmatpush.bf16.msra.mxu1 %v3078_v52  ;;  %v1817_v6 = vmax.f32 %v1773_v18, 0.0  ;;  %v3205_v18 = vld [vmem:[%s4592_s5 + $0x154] sm:$0xf0] }
 0x2fa   :  { %v1740_v30 = vpop.f32.mrf.mxu2 }
 0x2fc   :  { %v1686_v60 = vpop.f32.mrf.mxu1 }
 0x2fd   :  { %v1687_v20 = vadd.f32 %v4019_v57, %v1686_v60  ;;  %v1775_v60 = vadd.f32 %v4039_v45, %v1721_v12  ;;  %v3185_v45 = vld [vmem:[%s4592_s5 + $0xb4] sm:$0xf0] }
 0x2ff   :  { %v4140_v31 = vadd.f32 %v1740_v30, %v1687_v20  ;;  %v4177_v37 = vpop.f32.mrf.mxu3  ;;  %v3229_v30 = vld [vmem:[%s4592_s5 + $0x214] sm:$0xf0]  ;;  %v1818_v58 = vmax.f32 %v1775_v60, 0.0 }
 0x300   :  { %v3070_v38 = vor.u32 %v3229_v30, %v3069_v43  ;;  %v3207_v43 = vld [vmem:[%s4592_s5 + $0x164] sm:$0xf0]  ;;  %v2973_v30 = vld [vmem:[%s4592_s5 + $0x150] sm:$0xf] }
 0x301   :  { %v2974_v60 = vor.u32 %v3205_v18, %v2973_v30  ;;  %v3200_v18 = vld [vmem:[%s4592_s5 + $0x134] sm:$0xf] }
 0x302   :  { %v1743_v5 = vpop.f32.mrf.mxu2  ;;  %2383 = vmatpush.bf16.msra.mxu1 %v3070_v38 }
 0x304   :  { %v1689_v44 = vpop.f32.mrf.mxu1 }
 0x305   :  { %v1690_v15 = vadd.f32 %v4019_v57, %v1689_v44  ;;  %v2885_v44 = vld [vmem:[%s4592_s5 + $0xa0] sm:$0xf] }
 0x306   :  { %2384 = vmatpush.bf16.msra.mxu1 %v3062_v61  ;;  %v2965_v61 = vld [vmem:[%s4592_s5 + $0x140] sm:$0xf] }
 0x307   :  { %v1744_v0 = vadd.f32 %v1743_v5, %v1690_v15  ;;  %v2894_v5 = vor.u32 %v3185_v45, %v2893_v8  ;;  %v2886_v15 = vor.u32 %v3183_v41, %v2885_v44  ;;  %v2991_v45 = vld [vmem:[%s4592_s5 + $0x178] sm:$0xf0]  ;;  %v3037_v44 = vld [vmem:[%s4592_s5 + $0x1d0] sm:$0xf] }
 0x309   :  { %v1798_v29 = vadd.f32 %v1797_v13, %v1744_v0  ;;  %v1807_v13 = vpop.f32.mrf.mxu3  ;;  %2339 = vmatpush.bf16.msra.mxu2 %v2894_v5  ;;  %v2957_v5 = vld [vmem:[%s4592_s5 + $0x130] sm:$0xf] }
 0x30a   :  { %v1745_v55 = vpop.f32.mrf.mxu2 }
 0x30b   :  { %v1827_v2 = vmax.f32 %v1798_v29, 0.0 }
 0x30c   :  { %v1691_v26 = vpop.f32.mrf.mxu1 }
 0x30d   :  { %v1692_v25 = vadd.f32 %v4019_v57, %v1691_v26  ;;  %2340 = vmatpush.bf16.msra.mxu2 %v2886_v15 }
 0x30f   :  { %v1746_v35 = vadd.f32 %v1745_v55, %v1692_v25  ;;  %v3181_v55 = vld [vmem:[%s4592_s5 + $0x94] sm:$0xf0] }
 0x311   :  { %v1800_v50 = vadd.f32 %v1799_v22, %v1746_v35  ;;  %v2877_v22 = vld [vmem:[%s4592_s5 + $0x90] sm:$0xf]  ;;  %v1809_v25 = vpop.f32.mrf.mxu3 }
 0x312   :  { %v1748_v4 = vpop.f32.mrf.mxu2  ;;  %v2878_v26 = vor.u32 %v3181_v55, %v2877_v22  ;;  %v3201_v22 = vld [vmem:[%s4592_s5 + $0x134] sm:$0xf0]  ;;  %v3206_v55 = vld [vmem:[%s4592_s5 + $0x164] sm:$0xf] }
 0x313   :  { %v1828_v32 = vmax.f32 %v1800_v50, 0.0 }
 0x314   :  { %v1694_v3 = vpop.f32.mrf.mxu1  ;;  %2341 = vmatpush.bf16.msra.mxu2 %v2878_v26 }
 0x315   :  { %v1695_v33 = vadd.f32 %v4019_v57, %v1694_v3  ;;  %v3256_v62 = vpack.i.bf16 %v1828_v32, %v1827_v2  ;;  %v3179_v2 = vld [vmem:[%s4592_s5 + $0x84] sm:$0xf0] }
 0x317   :  { %v4165_v40 = vadd.f32 %v1748_v4, %v1695_v33  ;;  %3257 = vrot.lane.b32.xlu1 %v3256_v62, %s3269_s18  ;;  %v2869_v4 = vld [vmem:[%s4592_s5 + $0x80] sm:$0xf]  ;;  %v2989_v62 = vld [vmem:[%s4592_s5 + $0x170] sm:$0xf] }
 0x318   :  { %v2870_v32 = vor.u32 %v3179_v2, %v2869_v4  ;;  %v3219_v4 = vld [vmem:[%s4592_s5 + $0x1c4] sm:$0xf0] }
 0x319   :  { %v1812_v12 = vpop.f32.mrf.mxu3 }
 0x31a   :  { %v1750_v17 = vpop.f32.mrf.mxu2  ;;  %2342 = vmatpush.bf16.msra.mxu2 %v2870_v32 }
 0x31c   :  { %v1696_v47 = vpop.f32.mrf.mxu1 }
 0x31d   :  { %v1697_v28 = vadd.f32 %v4019_v57, %v1696_v47 }
 0x31f   :  { %v4186_v23 = vadd.f32 %v1750_v17, %v1697_v28  ;;  %v2990_v17 = vor.u32 %v3209_v42, %v2989_v62  ;;  %v2981_v28 = vld [vmem:[%s4592_s5 + $0x160] sm:$0xf] }
 0x320   :  { %v2982_v38 = vor.u32 %v3207_v43, %v2981_v28  ;;  %v2941_v28 = vld [vmem:[%s4592_s5 + $0x110] sm:$0xf]  ;;  %v3197_v43 = vld [vmem:[%s4592_s5 + $0x114] sm:$0xf0] }
 0x321   :  { %2349 = vmatpush.bf16.msrb.mxu2 %v2990_v17  ;;  %v2967_v17 = vld [vmem:[%s4592_s5 + $0x148] sm:$0xf0] }
 0x322   :  { %v1753_v49 = vpop.f32.mrf.mxu2  ;;  %v3253_v20 = vpop.permute.xlu0 %3252 }
 0x323   :  { %v3255_v48 = vunpack.i.h.bf16 %v3253_v20  ;;  %v3254_v56 = vunpack.i.l.bf16 %v3253_v20  ;;  %v3203_v20 = vld [vmem:[%s4592_s5 + $0x144] sm:$0xf0] }
 0x324   :  { %v1699_v9 = vpop.f32.mrf.mxu1 }
 0x325   :  { %v1867_v19 = vsel %vm1057_vm3, %v1817_v6, %v3254_v56  ;;  %v1868_v51 = vsel %vm1057_vm3, %v1818_v58, %v3255_v48  ;;  %v1700_v54 = vadd.f32 %v4019_v57, %v1699_v9  ;;  %2350 = vmatpush.bf16.msrb.mxu2 %v2982_v38  ;;  %v3054_v6 = vor.u32 %v3225_v63, %v3053_v10  ;;  %v3223_v48 = vld [vmem:[%s4592_s5 + $0x1e4] sm:$0xf0]  ;;  %v3208_v56 = vld [vmem:[%s4592_s5 + $0x174] sm:$0xf]  ;;  %v3013_v63 = vld [vmem:[%s4592_s5 + $0x1a0] sm:$0xf] }
 0x326   :  { %v4205_v59 = vpack.c.bf16 %v1868_v51, %v1867_v19  ;;  %v2966_v51 = vor.u32 %v3203_v20, %v2965_v61  ;;  %v2942_v10 = vor.u32 %v3197_v43, %v2941_v28  ;;  %v2933_v61 = vld [vmem:[%s4592_s5 + $0x100] sm:$0xf]  ;;  %v3195_v20 = vld [vmem:[%s4592_s5 + $0x104] sm:$0xf0]  ;;  %v3166_v28 = vld [vmem:[%s4592_s5 + $0x24] sm:$0xf] }
 0x327   :  { %v1754_v27 = vadd.f32 %v1753_v49, %v1700_v54  ;;  %2363 = vmatpush.bf16.msrb.mxu3 %v3054_v6  ;;  %v2994_v54 = vor.u32 %v3208_v56, %v2991_v45  ;;  %v1783_v56 = vadd.f32 %v4062_v11, %v4060_v24  ;;  %v3005_v45 = vld [vmem:[%s4592_s5 + $0x190] sm:$0xf]  ;;  %v2863_v11 = vld [vmem:[%s4592_s5 + $0x78] sm:$0xf0]  ;;  %v2823_v43 = vld [vmem:[%s4592_s5 + $0x28] sm:$0xf0] }
 0x328   :  { %2329 = vmatmul.bf16.vlgmr.msra.gmra.mxu3 %v4205_v59 }
 0x329   :  { %v1808_v29 = vadd.f32 %v1807_v13, %v1754_v27  ;;  %v3045_v13 = vld [vmem:[%s4592_s5 + $0x1e0] sm:$0xf]  ;;  %2351 = vmatpush.bf16.msrb.mxu2 %v2974_v60  ;;  %v1814_v27 = vpop.f32.mrf.mxu3  ;;  %2419 = vmatpush.bf16.msrb.mxu1 %v2994_v54  ;;  %v2959_v60 = vld [vmem:[%s4592_s5 + $0x138] sm:$0xf0] }
 0x32a   :  { %v1755_v0 = vpop.f32.mrf.mxu2  ;;  %v3046_v8 = vor.u32 %v3223_v48, %v3045_v13  ;;  %v2962_v6 = vor.u32 %v3200_v18, %v2959_v60  ;;  %v3198_v13 = vld [vmem:[%s4592_s5 + $0x124] sm:$0xf]  ;;  %v2951_v48 = vld [vmem:[%s4592_s5 + $0x128] sm:$0xf0]  ;;  %v2943_v54 = vld [vmem:[%s4592_s5 + $0x118] sm:$0xf0] }
 0x32b   :  { %v1831_v3 = vmax.f32 %v1808_v29, 0.0  ;;  %v2975_v29 = vld [vmem:[%s4592_s5 + $0x158] sm:$0xf0]  ;;  %v3190_v60 = vld [vmem:[%s4592_s5 + $0xe4] sm:$0xf] }
 0x32c   :  { %v1701_v1 = vpop.f32.mrf.mxu1  ;;  %2364 = vmatpush.bf16.msrb.mxu3 %v3046_v8  ;;  %v2934_v8 = vor.u32 %v3195_v20, %v2933_v61  ;;  %v2815_v18 = vld [vmem:[%s4592_s5 + $0x18] sm:$0xf0]  ;;  %v2935_v61 = vld [vmem:[%s4592_s5 + $0x108] sm:$0xf0] }
 0x32d   :  { %v1702_v16 = vadd.f32 %v4019_v57, %v1701_v1  ;;  %2352 = vmatpush.bf16.msrb.mxu2 %v2966_v51  ;;  %v3176_v51 = vld [vmem:[%s4592_s5 + $0x74] sm:$0xf] }
 0x32f   :  { %v1756_v35 = vadd.f32 %v1755_v0, %v1702_v16  ;;  %v2983_v0 = vld [vmem:[%s4592_s5 + $0x168] sm:$0xf0] }
 0x330   :  { %v2986_v1 = vor.u32 %v3206_v55, %v2983_v0  ;;  %v3211_v55 = vld [vmem:[%s4592_s5 + $0x184] sm:$0xf0]  ;;  %v3192_v0 = vld [vmem:[%s4592_s5 + $0xf4] sm:$0xf] }
 0x331   :  { %v1810_v50 = vadd.f32 %v1809_v25, %v1756_v35  ;;  %v3204_v25 = vld [vmem:[%s4592_s5 + $0x154] sm:$0xf]  ;;  %v2958_v35 = vor.u32 %v3201_v22, %v2957_v5  ;;  %v2954_v5 = vor.u32 %v3198_v13, %v2951_v48  ;;  %v2997_v22 = vld [vmem:[%s4592_s5 + $0x180] sm:$0xf]  ;;  %v2807_v13 = vld [vmem:[%s4592_s5 + $0x8] sm:$0xf0] }
 0x332   :  { %v1758_v21 = vpop.f32.mrf.mxu2  ;;  %2420 = vmatpush.bf16.msrb.mxu1 %v2986_v1  ;;  %v2978_v62 = vor.u32 %v3204_v25, %v2975_v29  ;;  %v3188_v48 = vld [vmem:[%s4592_s5 + $0xd4] sm:$0xf] }
 0x333   :  { %v1832_v33 = vmax.f32 %v1810_v50, 0.0  ;;  %v3029_v50 = vld [vmem:[%s4592_s5 + $0x1c0] sm:$0xf]  ;;  %2353 = vmatpush.bf16.msrb.mxu2 %v2958_v35  ;;  %v3174_v35 = vld [vmem:[%s4592_s5 + $0x64] sm:$0xf] }
 0x334   :  { %v1704_v39 = vpop.f32.mrf.mxu1 }
 0x335   :  { %v3261_v52 = vpack.i.bf16 %v1832_v33, %v1831_v3  ;;  %v1705_v47 = vadd.f32 %v4019_v57, %v1704_v39  ;;  %v2949_v3 = vld [vmem:[%s4592_s5 + $0x120] sm:$0xf]  ;;  %v3199_v33 = vld [vmem:[%s4592_s5 + $0x124] sm:$0xf0]  ;;  %v3202_v39 = vld [vmem:[%s4592_s5 + $0x144] sm:$0xf] }
 0x336   :  { %2421 = vmatpush.bf16.msrb.mxu1 %v2978_v62  ;;  %v2970_v30 = vor.u32 %v3202_v39, %v2967_v17  ;;  %v2839_v39 = vld [vmem:[%s4592_s5 + $0x48] sm:$0xf0] }
 0x337   :  { %3262 = vrot.lane.b32.xlu2 %v3261_v52, %s3269_s18  ;;  %v1759_v49 = vadd.f32 %v1758_v21, %v1705_v47  ;;  %v3030_v21 = vor.u32 %v3219_v4, %v3029_v50  ;;  %v2950_v52 = vor.u32 %v3199_v33, %v2949_v3  ;;  %v3217_v47 = vld [vmem:[%s4592_s5 + $0x1b4] sm:$0xf0]  ;;  %v2855_v50 = vld [vmem:[%s4592_s5 + $0x68] sm:$0xf0]  ;;  %v2998_v4 = vor.u32 %v3211_v55, %v2997_v22  ;;  %v3172_v3 = vld [vmem:[%s4592_s5 + $0x54] sm:$0xf] }
 0x338   :  { %v2847_v33 = vld [vmem:[%s4592_s5 + $0x58] sm:$0xf0]  ;;  %v2871_v22 = vld [vmem:[%s4592_s5 + $0x88] sm:$0xf0] }
 0x339   :  { %v1813_v41 = vadd.f32 %v1812_v12, %v1759_v49  ;;  %v3021_v12 = vld [vmem:[%s4592_s5 + $0x1b0] sm:$0xf]  ;;  %2354 = vmatpush.bf16.msrb.mxu2 %v2950_v52  ;;  %v3215_v49 = vld [vmem:[%s4592_s5 + $0x1a4] sm:$0xf0]  ;;  %v2850_v62 = vor.u32 %v3172_v3, %v2847_v33  ;;  %v3168_v52 = vld [vmem:[%s4592_s5 + $0x34] sm:$0xf]  ;;  %v1803_v3 = vadd.f32 %v4162_v53, %v4165_v40  ;;  %v1805_v33 = vadd.f32 %v4177_v37, %v4186_v23 }
 0x33a   :  { %v1760_v19 = vpop.f32.mrf.mxu2  ;;  %v3022_v38 = vor.u32 %v3217_v47, %v3021_v12  ;;  %2422 = vmatpush.bf16.msrb.mxu1 %v2970_v30  ;;  %v2831_v12 = vld [vmem:[%s4592_s5 + $0x38] sm:$0xf0]  ;;  %v2826_v30 = vor.u32 %v3166_v28, %v2823_v43  ;;  %v3232_v53 = vld [vmem:[%s4592_s5 + $0x234] sm:$0xf] }
 0x33b   :  { %v1833_v2 = vmax.f32 %v1813_v41, 0.0  ;;  %v2834_v47 = vor.u32 %v3168_v52, %v2831_v12  ;;  %v3087_v40 = vld [vmem:[%s4592_s5 + $0x238] sm:$0xf0]  ;;  %v1829_v37 = vmax.f32 %v1803_v3, 0.0  ;;  %v1830_v23 = vmax.f32 %v1805_v33, 0.0 }
 0x33c   :  { %v1706_v58 = vpop.f32.mrf.mxu1 }
 0x33d   :  { %v1707_v9 = vadd.f32 %v4019_v57, %v1706_v58  ;;  %v3221_v57 = vld [vmem:[%s4592_s5 + $0x1d4] sm:$0xf0]  ;;  %v3014_v58 = vor.u32 %v3215_v49, %v3013_v63  ;;  %2355 = vmatpush.bf16.msrb.mxu2 %v2942_v10  ;;  %v2919_v10 = vld [vmem:[%s4592_s5 + $0xe8] sm:$0xf0]  ;;  %v3194_v63 = vld [vmem:[%s4592_s5 + $0x104] sm:$0xf] }
 0x33e   :  { %v3038_v16 = vor.u32 %v3221_v57, %v3037_v44  ;;  %2423 = vmatpush.bf16.msrb.mxu1 %v2962_v6  ;;  %v1821_v44 = vmax.f32 %v1783_v56, 0.0  ;;  %v2922_v49 = vor.u32 %v3190_v60, %v2919_v10  ;;  %v2938_v20 = vor.u32 %v3194_v63, %v2935_v61  ;;  %v2911_v56 = vld [vmem:[%s4592_s5 + $0xd8] sm:$0xf0]  ;;  %v3031_v60 = vld [vmem:[%s4592_s5 + $0x1c8] sm:$0xf0] }
 0x33f   :  { %v1761_v15 = vadd.f32 %v1760_v19, %v1707_v9  ;;  %v1785_v9 = vadd.f32 %v4067_v34, %v4065_v46  ;;  %v3213_v19 = vld [vmem:[%s4592_s5 + $0x194] sm:$0xf0]  ;;  %v3196_v34 = vld [vmem:[%s4592_s5 + $0x114] sm:$0xf]  ;;  %v3230_v10 = vld [vmem:[%s4592_s5 + $0x224] sm:$0xf] }
 0x340   :  { %2365 = vmatpush.bf16.msrb.mxu3 %v3038_v16  ;;  %v3006_v46 = vor.u32 %v3213_v19, %v3005_v45  ;;  %v2866_v16 = vor.u32 %v3176_v51, %v2863_v11  ;;  %v2946_v25 = vor.u32 %v3196_v34, %v2943_v54  ;;  %v3186_v45 = vld [vmem:[%s4592_s5 + $0xc4] sm:$0xf]  ;;  %v2903_v19 = vld [vmem:[%s4592_s5 + $0xc8] sm:$0xf0]  ;;  %v3216_v61 = vld [vmem:[%s4592_s5 + $0x1b4] sm:$0xf] }
 0x341   :  { %v1815_v26 = vadd.f32 %v1814_v27, %v1761_v15  ;;  %v1822_v57 = vmax.f32 %v1785_v9, 0.0  ;;  %2356 = vmatpush.bf16.msrb.mxu2 %v2934_v8  ;;  %v2927_v27 = vld [vmem:[%s4592_s5 + $0xf8] sm:$0xf0]  ;;  %v2914_v9 = vor.u32 %v3188_v48, %v2911_v56  ;;  %v2906_v51 = vor.u32 %v3186_v45, %v2903_v19  ;;  %v2887_v34 = vld [vmem:[%s4592_s5 + $0xa8] sm:$0xf0] }
 0x342   :  { %2424 = vmatpush.bf16.msrb.mxu1 %v2954_v5  ;;  %v3184_v5 = vld [vmem:[%s4592_s5 + $0xb4] sm:$0xf]  ;;  %v3079_v63 = vld [vmem:[%s4592_s5 + $0x228] sm:$0xf0]  ;;  %v3214_v56 = vld [vmem:[%s4592_s5 + $0x1a4] sm:$0xf] }
 0x343   :  { %v1834_v32 = vmax.f32 %v1815_v26, 0.0  ;;  %v3226_v45 = vld [vmem:[%s4592_s5 + $0x204] sm:$0xf]  ;;  %v3063_v19 = vld [vmem:[%s4592_s5 + $0x208] sm:$0xf0] }
 0x344   :  { %2366 = vmatpush.bf16.msrb.mxu3 %v3030_v21  ;;  %v3170_v21 = vld [vmem:[%s4592_s5 + $0x44] sm:$0xf] }
 0x345   :  { %v4309_v42 = vpack.c.bf16 %v1834_v32, %v1833_v2  ;;  %v2930_v2 = vor.u32 %v3192_v0, %v2927_v27  ;;  %v2858_v32 = vor.u32 %v3174_v35, %v2855_v50  ;;  %v2842_v17 = vor.u32 %v3170_v21, %v2839_v39  ;;  %v3220_v21 = vld [vmem:[%s4592_s5 + $0x1d4] sm:$0xf] }
 0x346   :  { %2425 = vmatpush.bf16.msrb.mxu1 %v2946_v25  ;;  %v1793_v0 = vadd.f32 %v4082_v14, %v4112_v7  ;;  %v1795_v27 = vadd.f32 %v4109_v36, %v4140_v31  ;;  %v3222_v36 = vld [vmem:[%s4592_s5 + $0x1e4] sm:$0xf]  ;;  %v3047_v31 = vld [vmem:[%s4592_s5 + $0x1e8] sm:$0xf0] }
 0x347   :  { %3091 = vmatmul.msk.bf16.vlgmr.msra.gmra.mxu1 %vm1057_vm3, %v4309_v42 }
 0x348   :  { %2367 = vmatpush.bf16.msrb.mxu3 %v3022_v38  ;;  %v3164_v38 = vld [vmem:[%s4592_s5 + $0x14] sm:$0xf]  ;;  %v1825_v25 = vmax.f32 %v1793_v0, 0.0  ;;  %v1826_v35 = vmax.f32 %v1795_v27, 0.0 }
 0x349   :  { %v2818_v6 = vor.u32 %v3164_v38, %v2815_v18  ;;  %v3090_v38 = vor.u32 %v3232_v53, %v3087_v40 }
 0x34a   :  { %2426 = vmatpush.bf16.msrb.mxu1 %v2938_v20  ;;  %v3082_v20 = vor.u32 %v3230_v10, %v3079_v63 }
 0x34c   :  { %2368 = vmatpush.bf16.msrb.mxu3 %v3014_v58  ;;  %v3162_v58 = vld [vmem:[%s4592_s5 + $0x4] sm:$0xf] }
 0x34d   :  { %v2810_v8 = vor.u32 %v3162_v58, %v2807_v13  ;;  %v3228_v58 = vld [vmem:[%s4592_s5 + $0x214] sm:$0xf]  ;;  %v3071_v13 = vld [vmem:[%s4592_s5 + $0x218] sm:$0xf0] }
 0x350   :  { %2369 = vmatpush.bf16.msrb.mxu3 %v3006_v46  ;;  %v3182_v46 = vld [vmem:[%s4592_s5 + $0xa4] sm:$0xf] }
 0x351   :  { %v3248_v24 = vpop.permute.xlu2 %3247  ;;  %v2890_v54 = vor.u32 %v3182_v46, %v2887_v34  ;;  %v3210_v34 = vld [vmem:[%s4592_s5 + $0x184] sm:$0xf] }
 0x352   :  { %v3250_v41 = vunpack.i.h.bf16 %v3248_v24  ;;  %v3249_v15 = vunpack.i.l.bf16 %v3248_v24  ;;  %v2895_v24 = vld [vmem:[%s4592_s5 + $0xb8] sm:$0xf0] }
 0x353   :  { %v2898_v11 = vor.u32 %v3184_v5, %v2895_v24  ;;  %v3066_v5 = vor.u32 %v3226_v45, %v3063_v19  ;;  %v3212_v24 = vld [vmem:[%s4592_s5 + $0x194] sm:$0xf] }
 0x354   :  { %v1869_v1 = vsel %vm1057_vm3, %v1821_v44, %v3249_v15  ;;  %v1870_v26 = vsel %vm1057_vm3, %v1822_v57, %v3250_v41  ;;  %2370 = vmatpush.bf16.msrb.mxu3 %v2998_v4  ;;  %v3180_v44 = vld [vmem:[%s4592_s5 + $0x94] sm:$0xf]  ;;  %v2879_v57 = vld [vmem:[%s4592_s5 + $0x98] sm:$0xf0]  ;;  %v3178_v15 = vld [vmem:[%s4592_s5 + $0x84] sm:$0xf] }
 0x355   :  { %v4391_v29 = vpack.c.bf16 %v1870_v26, %v1869_v1  ;;  %v2882_v41 = vor.u32 %v3180_v44, %v2879_v57  ;;  %v2874_v55 = vor.u32 %v3178_v15, %v2871_v22  ;;  %v3224_v26 = vld [vmem:[%s4592_s5 + $0x1f4] sm:$0xf]  ;;  %v1952_v15 = vld [vmem:[%s4593_s6] sm:$0x3] }
 0x356   :  { %v1954_v22 = vperm.slane %v1952_v15, 0 }
 0x357   :  { %2343 = vmatmul.bf16.vlgmr.msra.gmra.mxu2 %v4391_v29 }
 0x358   :  { %2391 = vmatpush.bf16.msra.mxu2 %v2866_v16  ;;  %2405 = vmatpush.bf16.msra.mxu3 %v2930_v2  ;;  %v3055_v16 = vld [vmem:[%s4592_s5 + $0x1f8] sm:$0xf0] }
 0x359   :  { %v3058_v7 = vor.u32 %v3224_v26, %v3055_v16 }
 0x35c   :  { %2392 = vmatpush.bf16.msra.mxu2 %v2858_v32  ;;  %2406 = vmatpush.bf16.msra.mxu3 %v2922_v49 }
 0x360   :  { %2393 = vmatpush.bf16.msra.mxu2 %v2850_v62  ;;  %2407 = vmatpush.bf16.msra.mxu3 %v2914_v9  ;;  %v3050_v62 = vor.u32 %v3222_v36, %v3047_v31  ;;  %v3074_v9 = vor.u32 %v3228_v58, %v3071_v13 }
 0x364   :  { %2394 = vmatpush.bf16.msra.mxu2 %v2842_v17  ;;  %2408 = vmatpush.bf16.msra.mxu3 %v2906_v51  ;;  %v3039_v17 = vld [vmem:[%s4592_s5 + $0x1d8] sm:$0xf0] }
 0x365   :  { %v3042_v43 = vor.u32 %v3220_v21, %v3039_v17 }
 0x368   :  { %2395 = vmatpush.bf16.msra.mxu2 %v2834_v47  ;;  %2409 = vmatpush.bf16.msra.mxu3 %v2898_v11  ;;  %v3007_v11 = vld [vmem:[%s4592_s5 + $0x198] sm:$0xf0] }
 0x369   :  { %v3010_v46 = vor.u32 %v3212_v24, %v3007_v11 }
 0x36c   :  { %2396 = vmatpush.bf16.msra.mxu2 %v2826_v30  ;;  %2410 = vmatpush.bf16.msra.mxu3 %v2890_v54  ;;  %v3218_v30 = vld [vmem:[%s4592_s5 + $0x1c4] sm:$0xf] }
 0x36d   :  { %v3034_v49 = vor.u32 %v3218_v30, %v3031_v60 }
 0x370   :  { %2397 = vmatpush.bf16.msra.mxu2 %v2818_v6  ;;  %2411 = vmatpush.bf16.msra.mxu3 %v2882_v41  ;;  %v3023_v6 = vld [vmem:[%s4592_s5 + $0x1b8] sm:$0xf0] }
 0x371   :  { %v3026_v48 = vor.u32 %v3216_v61, %v3023_v6 }
 0x374   :  { %2398 = vmatpush.bf16.msra.mxu2 %v2810_v8  ;;  %2412 = vmatpush.bf16.msra.mxu3 %v2874_v55  ;;  %v3015_v8 = vld [vmem:[%s4592_s5 + $0x1a8] sm:$0xf0] }
 0x375   :  { %v3018_v51 = vor.u32 %v3214_v56, %v3015_v8 }
 0x389   :  { %v3258_v1 = vpop.permute.xlu1 %3257 }
 0x38a   :  { %v3260_v50 = vunpack.i.h.bf16 %v3258_v1  ;;  %v3259_v4 = vunpack.i.l.bf16 %v3258_v1 }
 0x38c   :  { %v1871_v2 = vsel %vm1057_vm3, %v1825_v25, %v3259_v4  ;;  %v1872_v14 = vsel %vm1057_vm3, %v1826_v35, %v3260_v50 }
 0x38d   :  { %v1877_v32 = vpack.c.bf16 %v1872_v14, %v1871_v2 }
 0x38f   :  { %2357 = vmatmul.bf16.vlgmr.msrb.gmra.mxu2 %v1877_v32  ;;  %2427 = vmatmul.bf16.vlgmr.msrb.gmra.mxu1 %v1877_v32 }
 0x390   :  { %2433 = vmatpush.bf16.msrb.mxu2 %v3058_v7 }
 0x391   :  { %v3263_v39 = vpop.permute.xlu2 %3262 }
 0x392   :  { %v3265_v52 = vunpack.i.h.bf16 %v3263_v39  ;;  %v3264_v12 = vunpack.i.l.bf16 %v3263_v39 }
 0x394   :  { %v1874_v47 = vsel %vm1057_vm3, %v1830_v23, %v3265_v52  ;;  %v1873_v28 = vsel %vm1057_vm3, %v1829_v37, %v3264_v12  ;;  %2434 = vmatpush.bf16.msrb.mxu2 %v3050_v62  ;;  %v1955_v62 = vperm.slane %v1952_v15, 1 }
 0x395   :  { %v1878_v18 = vpack.c.bf16 %v1874_v47, %v1873_v28 }
 0x397   :  { %2371 = vmatmul.bf16.vlgmr.msrb.gmra.mxu3 %v1878_v18 }
 0x398   :  { %2435 = vmatpush.bf16.msrb.mxu2 %v3042_v43  ;;  %2451 = vmatpush.bf16.msrb.mxu3 %v3090_v38 }
 0x39c   :  { %2436 = vmatpush.bf16.msrb.mxu2 %v3034_v49  ;;  %2452 = vmatpush.bf16.msrb.mxu3 %v3082_v20 }
 0x39f   :  { %2399 = vmatmul.bf16.vlgmr.msra.gmra.mxu2 %v4205_v59  ;;  %v2999_v59 = vld [vmem:[%s4592_s5 + $0x188] sm:$0xf0] }
 0x3a0   :  { %2437 = vmatpush.bf16.msrb.mxu2 %v3026_v48  ;;  %2453 = vmatpush.bf16.msrb.mxu3 %v3074_v9  ;;  %v3002_v54 = vor.u32 %v3210_v34, %v2999_v59 }
 0x3a4   :  { %2438 = vmatpush.bf16.msrb.mxu2 %v3018_v51  ;;  %2454 = vmatpush.bf16.msrb.mxu3 %v3066_v5 }
 0x3a7   :  { %2413 = vmatmul.bf16.vlgmr.msra.gmra.mxu3 %v4391_v29 }
 0x3a8   :  { %2439 = vmatpush.bf16.msrb.mxu2 %v3010_v46 }
 0x3ab   :  { %v2330_v57 = vpop.f32.mrf.mxu3 }
 0x3ac   :  { %2440 = vmatpush.bf16.msrb.mxu2 %v3002_v54  ;;  %v2331_v27 = vadd.f32 %v2330_v57, %v1954_v22 }
 0x3af   :  { %2441 = vmatmul.bf16.vlgmr.msrb.gmra.mxu2 %v1878_v18 }
 0x3b3   :  { %v2332_v55 = vpop.f32.mrf.mxu3 }
 0x3b4   :  { %v2333_v50 = vadd.f32 %v2332_v55, %v1954_v22 }
 0x3b7   :  { %3092 = vmatmul.msk.bf16.vlgmr.msrb.gmra.mxu3 %vm1057_vm3, %v4309_v42 }
 0x3c4   :  { %v2386_v29 = vpop.f32.mrf.mxu1 }
 0x3cc   :  { %v2388_v36 = vpop.f32.mrf.mxu1 }
 0x3da   :  { %v2344_v44 = vpop.f32.mrf.mxu2 }
 0x3db   :  { %v2345_v1 = vadd.f32 %v2344_v44, %v2331_v27 }
 0x3e2   :  { %v2346_v41 = vpop.f32.mrf.mxu2 }
 0x3e3   :  { %v2347_v42 = vadd.f32 %v2346_v41, %v2333_v50 }
 0x40c   :  { %v2428_v53 = vpop.f32.mrf.mxu1 }
 0x412   :  { %v2358_v0 = vpop.f32.mrf.mxu2 }
 0x413   :  { %v2359_v26 = vadd.f32 %v2358_v0, %v2345_v1 }
 0x414   :  { %v2430_v43 = vpop.f32.mrf.mxu1 }
 0x41a   :  { %v2360_v16 = vpop.f32.mrf.mxu2  ;;  %v2372_v25 = vpop.f32.mrf.mxu3 }
 0x41b   :  { %v2373_v35 = vadd.f32 %v2372_v25, %v2359_v26  ;;  %v2361_v2 = vadd.f32 %v2360_v16, %v2347_v42 }
 0x41d   :  { %v2387_v4 = vadd.f32 %v2386_v29, %v2373_v35 }
 0x41f   :  { %2461 = vst [vmem:[%s4594_s7] sm:$0xff] %v2387_v4 }
 0x422   :  { %v2374_v14 = vpop.f32.mrf.mxu3  ;;  %v2400_v7 = vpop.f32.mrf.mxu2 }
 0x423   :  { %v2375_v32 = vadd.f32 %v2374_v14, %v2361_v2  ;;  %v2401_v21 = vadd.f32 %v2400_v7, %v1955_v62 }
 0x425   :  { %v2389_v31 = vadd.f32 %v2388_v36, %v2375_v32 }
 0x427   :  { %2463 = vst [vmem:[%s4594_s7 + $0x10] sm:$0xff] %v2389_v31 }
 0x42a   :  { %v2402_v3 = vpop.f32.mrf.mxu2  ;;  %v2414_v33 = vpop.f32.mrf.mxu3 }
 0x42b   :  { %v2415_v17 = vadd.f32 %v2414_v33, %v2401_v21  ;;  %v2403_v23 = vadd.f32 %v2402_v3, %v1955_v62 }
 0x42d   :  { %v2429_v37 = vadd.f32 %v2428_v53, %v2415_v17 }
 0x432   :  { %v2416_v39 = vpop.f32.mrf.mxu3  ;;  %v2442_v40 = vpop.f32.mrf.mxu2 }
 0x433   :  { %v2443_v52 = vadd.f32 %v2442_v40, %v2429_v37  ;;  %v2417_v47 = vadd.f32 %v2416_v39, %v2403_v23 }
 0x435   :  { %v2431_v38 = vadd.f32 %v2430_v43, %v2417_v47 }
 0x43a   :  { %v2456_v12 = vpop.f32.mrf.mxu3  ;;  %v2444_v30 = vpop.f32.mrf.mxu2 }
 0x43b   :  { %v2457_v28 = vadd.f32 %v2456_v12, %v2443_v52  ;;  %v2445_v18 = vadd.f32 %v2444_v30, %v2431_v38 }
 0x43d   :  { %2462 = vst [vmem:[%s4594_s7 + $0x8] sm:$0xff] %v2457_v28 }
 0x442   :  { %v2458_v60 = vpop.f32.mrf.mxu3 }
 0x443   :  { %v2459_v10 = vadd.f32 %v2458_v60, %v2445_v18 }
 0x445   :  { %2464 = vst [vmem:[%s4594_s7 + $0x18] sm:$0xff] %v2459_v10 }

</bundles_post_ra>
